<compile_context>
chip_gen: v7x
topology: tpu7x:2x2x1
jax: 0.10.0
libtpu: 0.0.40
codegen_flags: <defaults>
</compile_context>

<pallas_src>
import functools

import numpy as np
import jax
import jax.numpy as jnp
from jax import lax
from jax.experimental import pallas as pl
from jax.experimental.pallas import tpu as pltpu


LANE = 128
SUBLANE = 8
VMEM_LIMIT = 48 * 1024 * 1024   # > 16/32 MiB scoped defaults, < v7x 64 MiB physical


def _round_up(v, m):
    return (v + m - 1) // m * m


# ----------------------------- kernels ------------------------------------


def _train_kernel(lo_ref, hi_ref, st_ref, en_ref, att_ref, x_ref, w_ref, b_ref,
                  out_ref, m_s, l_s, acc_s):
    """Train: one (TB bags) x (Nt sentences) tile per grid step.

    Online masked softmax over the sentence axis; lo/hi (SMEM scalar prefetch)
    give this bag tile's sentence range so non-overlapping N tiles skip compute.
    """
    i = pl.program_id(0)
    k = pl.program_id(1)
    nt = x_ref.shape[0]
    tb = out_ref.shape[0]

    @pl.when(k == 0)
    def _():
        m_s[...] = jnp.full_like(m_s, -jnp.inf)
        l_s[...] = jnp.zeros_like(l_s)
        acc_s[...] = jnp.zeros_like(acc_s)

    base = k * nt
    overlap = (base < hi_ref[i]) & (base + nt > lo_ref[i])

    @pl.when(overlap)
    def _():
        col = base + lax.broadcasted_iota(jnp.int32, (tb, nt), 1)
        mask = (col >= st_ref[...]) & (col < en_ref[...])              # (TB, Nt)
        a = jnp.where(mask, att_ref[...], -jnp.inf)                    # f32
        m_prev = m_s[...]
        m_new = jnp.maximum(m_prev, jnp.max(a, axis=1, keepdims=True))
        m_shift = jnp.where(m_new == -jnp.inf, 0.0, m_new)             # empty-bag guard
        alpha = jnp.exp(m_prev - m_shift)
        p = jnp.exp(a - m_shift)                                       # masked -> exp(-inf) = 0
        l_s[...] = alpha * l_s[...] + jnp.sum(p, axis=1, keepdims=True)
        acc_s[...] = alpha * acc_s[...] + jnp.dot(
            p.astype(x_ref.dtype), x_ref[...], preferred_element_type=jnp.float32)
        m_s[...] = m_new

    @pl.when(k == pl.num_programs(1) - 1)
    def _():
        inv = pl.reciprocal(jnp.where(l_s[...] > 0.0, l_s[...], 1.0), approx=True)
        repre = (acc_s[...] * inv).astype(w_ref.dtype)                 # bf16 for the MXU
        logits = lax.dot_general(repre, w_ref[...], (((1,), (1,)), ((), ())),
                                 preferred_element_type=jnp.float32)   # (TB, C_pad)
        out_ref[...] = logits + b_ref[...]


def _test_kernel(lo_ref, hi_ref, st_ref, en_ref, att_ref, x_ref, w_ref, b_ref,
                 out_ref, m_s, l_s, acc_s, *, num_classes):
    """Test: one (TB bags) x (Nt sentences) tile; per (bag, class) online softmax.

    att_ref is the hoisted x @ W^T attention-logit matrix transposed to
    (C_pad, Nt); each (bag, class) row reuses its class row (no per-bag weight
    replication).  Output is a lane-dense (TB, C_pad) block holding
    diag(softmax(logits)) at each class lane.
    """
    i = pl.program_id(0)
    k = pl.program_id(1)
    nt = x_ref.shape[0]
    d_pad = x_ref.shape[1]
    tb, c_pad = out_ref.shape

    @pl.when(k == 0)
    def _():
        m_s[...] = jnp.full_like(m_s, -jnp.inf)
        l_s[...] = jnp.zeros_like(l_s)
        acc_s[...] = jnp.zeros_like(acc_s)

    base = k * nt
    overlap = (base < hi_ref[i]) & (base + nt > lo_ref[i])

    @pl.when(overlap)
    def _():
        col = base + lax.broadcasted_iota(jnp.int32, (tb, nt), 1)
        mask = (col >= st_ref[...]) & (col < en_ref[...])              # (TB, Nt)
        a = jnp.where(mask[:, None, :], att_ref[...][None, :, :], -jnp.inf)  # (TB, Cp, Nt)
        m_prev = m_s[...]                                              # (TB, Cp, 1)
        m_new = jnp.maximum(m_prev, jnp.max(a, axis=2, keepdims=True))
        m_shift = jnp.where(m_new == -jnp.inf, 0.0, m_new)             # empty-bag guard
        alpha = jnp.exp(m_prev - m_shift)
        p = jnp.exp(a - m_shift)                                       # (TB, Cp, Nt)
        l_s[...] = alpha * l_s[...] + jnp.sum(p, axis=2, keepdims=True)
        part = jnp.dot(p.reshape(tb * c_pad, nt).astype(x_ref.dtype), x_ref[...],
                       preferred_element_type=jnp.float32)             # (TB*Cp, D_pad)
        acc_s[...] = alpha * acc_s[...] + part.reshape(tb, c_pad, d_pad)
        m_s[...] = m_new

    @pl.when(k == pl.num_programs(1) - 1)
    def _():
        inv = pl.reciprocal(jnp.where(l_s[...] > 0.0, l_s[...], 1.0), approx=True)
        repre = (acc_s[...] * inv).reshape(tb * c_pad, d_pad).astype(w_ref.dtype)
        logits = lax.dot_general(repre, w_ref[...], (((1,), (1,)), ((), ())),
                                 preferred_element_type=jnp.float32) + b_ref[...]  # (TB*Cp, Cp)
        logits3 = logits.reshape(tb, c_pad, c_pad)       # [bag, attention class, scored class]
        lane = lax.broadcasted_iota(jnp.int32, (tb, c_pad, c_pad), 2)
        crow = lax.broadcasted_iota(jnp.int32, (tb, c_pad, c_pad), 1)
        neg = jnp.where(lane < num_classes, logits3, -jnp.inf)         # mask padded classes
        lm = jnp.max(neg, axis=2, keepdims=True)
        e = jnp.exp(neg - lm)
        inv2 = 1.0 / jnp.sum(e, axis=2, keepdims=True)                 # exact on final probs
        prob = e * inv2
        # diag(softmax(logits)) placed at its class lane: out[b, c] = prob[b, c, c]
        out_ref[...] = jnp.sum(jnp.where(lane == crow, prob, 0.0), axis=1)


# ----------------------------- wrapper ------------------------------------


def attention_forward(x, input_scope, is_train, weight, bias, query=None,
                      bags_per_tile=None, sentences_per_tile=512):
    """Mirrors Attention.forward.

    x: (N,D) f32 sentence reps, input_scope: (B+1,) i32 bag boundaries,
    weight: (C,D) relation embedding, bias: (C,), query: (N,) i32 (train only).
    Returns (B,C) logits (train) or (B,C) diag-softmax probabilities (test).
    """
    x = x.astype(jnp.float32)
    weight = weight.astype(jnp.float32)
    n, d = x.shape
    c = weight.shape[0]
    b = int(input_scope.shape[0]) - 1

    c_pad = _round_up(c, LANE)
    d_pad = _round_up(d, LANE)                                # lane-dense D
    nt = min(_round_up(sentences_per_tile, LANE), _round_up(n, LANE))
    n_pad = _round_up(n, nt)
    n_nt = n_pad // nt

    if bags_per_tile is None:
        # Train: big M for the MXU.  Test: each bag carries C_pad class rows, so a
        # small bag tile already gives M = tb * C_pad >= 1024 MXU rows.
        bags_per_tile = 128 if is_train else 8
    tb = _round_up(bags_per_tile, SUBLANE)
    b_pad = _round_up(max(b, 1), tb)
    n_bt = b_pad // tb

    scope = input_scope.astype(jnp.int32)
    starts = jnp.zeros((b_pad,), jnp.int32).at[:b].set(scope[:-1])
    ends = jnp.zeros((b_pad,), jnp.int32).at[:b].set(scope[1:])

    # Per-bag-tile sentence range [lo, hi) -> SMEM scalar prefetch for tile skipping.
    st2 = starts.reshape(n_bt, tb)
    en2 = ends.reshape(n_bt, tb)
    big = jnp.int32(np.iinfo(np.int32).max)
    tile_lo = jnp.min(jnp.where(en2 > st2, st2, big), axis=1).astype(jnp.int32)
    tile_hi = jnp.max(en2, axis=1).astype(jnp.int32)

    # bf16 matmul operands (f32 accumulation in-kernel); softmax math stays f32.
    x_bf = jnp.zeros((n_pad, d_pad), jnp.bfloat16).at[:n, :d].set(x.astype(jnp.bfloat16))
    w_bf = jnp.zeros((c_pad, d_pad), jnp.bfloat16).at[:c, :d].set(weight.astype(jnp.bfloat16))
    bpad = jnp.zeros((1, c_pad), jnp.float32).at[0, :c].set(bias.astype(jnp.float32))

    cparams = pltpu.CompilerParams(
        dimension_semantics=("parallel", "arbitrary"),   # bag tiles independent; N = reduction
        vmem_limit_bytes=VMEM_LIMIT)

    if is_train:
        # Hoisted bag-independent attention logits sum(x * W[query], 1) (XLA glue).
        relq = jnp.take(weight, query, axis=0)
        att = jnp.zeros((1, n_pad), jnp.float32).at[0, :n].set(jnp.sum(x * relq, axis=1))

        out = pl.pallas_call(
            _train_kernel,
            out_shape=jax.ShapeDtypeStruct((b_pad, c_pad), jnp.float32),
            grid_spec=pltpu.PrefetchScalarGridSpec(
                num_scalar_prefetch=2,
                grid=(n_bt, n_nt),
                in_specs=[
                    pl.BlockSpec((tb, 1), lambda i, k, lo, hi: (i, 0)),         # bag starts
                    pl.BlockSpec((tb, 1), lambda i, k, lo, hi: (i, 0)),         # bag ends
                    pl.BlockSpec((1, nt), lambda i, k, lo, hi: (0, k)),         # att logits (streamed)
                    pl.BlockSpec((nt, d_pad), lambda i, k, lo, hi: (k, 0)),     # x (streamed)
                    pl.BlockSpec((c_pad, d_pad), lambda i, k, lo, hi: (0, 0)),  # W (resident)
                    pl.BlockSpec((1, c_pad), lambda i, k, lo, hi: (0, 0)),      # bias (resident)
                ],
                out_specs=pl.BlockSpec((tb, c_pad), lambda i, k, lo, hi: (i, 0)),
                scratch_shapes=[pltpu.VMEM((tb, 1), jnp.float32),       # running max
                                pltpu.VMEM((tb, 1), jnp.float32),       # running denom
                                pltpu.VMEM((tb, d_pad), jnp.float32)],  # scores @ x accumulator
            ),
            compiler_params=cparams,
        )(tile_lo, tile_hi, starts[:, None], ends[:, None], att, x_bf, w_bf, bpad)
        return out[:b, :c]

    # ---------------- test / inference branch ----------------
    # Hoisted attention logits x @ W^T computed ONCE (f32 XLA matmul), transposed to
    # (C_pad, N_pad): every (bag, class) softmax reads its class row directly.
    attT = jnp.zeros((c_pad, n_pad), jnp.float32).at[:c, :n].set(jnp.dot(x, weight.T).T)

    out = pl.pallas_call(
        functools.partial(_test_kernel, num_classes=c),
        out_shape=jax.ShapeDtypeStruct((b_pad, c_pad), jnp.float32),
        grid_spec=pltpu.PrefetchScalarGridSpec(
            num_scalar_prefetch=2,
            grid=(n_bt, n_nt),
            in_specs=[
                pl.BlockSpec((tb, 1), lambda i, k, lo, hi: (i, 0)),          # bag starts
                pl.BlockSpec((tb, 1), lambda i, k, lo, hi: (i, 0)),          # bag ends
                pl.BlockSpec((c_pad, nt), lambda i, k, lo, hi: (0, k)),      # attT (streamed)
                pl.BlockSpec((nt, d_pad), lambda i, k, lo, hi: (k, 0)),      # x (streamed)
                pl.BlockSpec((c_pad, d_pad), lambda i, k, lo, hi: (0, 0)),   # W (resident)
                pl.BlockSpec((1, c_pad), lambda i, k, lo, hi: (0, 0)),       # bias (resident)
            ],
            out_specs=pl.BlockSpec((tb, c_pad), lambda i, k, lo, hi: (i, 0)),
            scratch_shapes=[pltpu.VMEM((tb, c_pad, 1), jnp.float32),         # running max
                            pltpu.VMEM((tb, c_pad, 1), jnp.float32),         # running denom
                            pltpu.VMEM((tb, c_pad, d_pad), jnp.float32)],    # scores @ x accumulator
        ),
        compiler_params=cparams,
    )(tile_lo, tile_hi, starts[:, None], ends[:, None], attT, x_bf, w_bf, bpad)
    return out[:b, :c]


# ----------------------------- reference (plain JAX) ------------------------


def _reference(x, scope, is_train, weight, bias, query=None):
    scope = np.asarray(scope)
    outs = []
    if is_train:
        relq = jnp.take(weight, query, axis=0)
        att = jnp.sum(x * relq, axis=1, keepdims=True)
        for i in range(len(scope) - 1):
            sen = x[scope[i]:scope[i + 1]]
            sc = jax.nn.softmax(att[scope[i]:scope[i + 1]].T, axis=1)
            outs.append(jnp.squeeze(sc @ sen))
        stack = jnp.stack(outs)
        return stack @ weight.T + bias
    else:
        att = x @ weight.T
        for i in range(len(scope) - 1):
            sen = x[scope[i]:scope[i + 1]]
            sc = jax.nn.softmax(att[scope[i]:scope[i + 1]].T, axis=1)
            repre = sc @ sen
            logits = repre @ weight.T + bias
            outs.append(jnp.diag(jax.nn.softmax(logits, axis=1)))
        return jnp.stack(outs)


# ----------------------------- main ------------------------------------


if __name__ == "__main__":
    # Small shapes implied by the module: N sentences, D=relation_dim, C=num_classes.
    N, D, C = 12, 32, 8
    scope = jnp.array([0, 4, 7, 12], dtype=jnp.int32)   # 3 bags

    key = jax.random.PRNGKey(0)
    k1, k2, k3, k4 = jax.random.split(key, 4)
    a = float(np.sqrt(6.0 / (C + D)))                   # xavier_uniform_ bound
    weight = jax.random.uniform(k1, (C, D), jnp.float32, -a, a)
    bias = jax.random.normal(k2, (C,), jnp.float32)     # normal_

    x = jax.random.normal(k3, (N, D), jnp.float32)
    query = jax.random.randint(k4, (N,), 0, C, dtype=jnp.int32)

    # train branch
    logits_train = jax.block_until_ready(attention_forward(x, scope, True, weight, bias, query))
    # test branch
    probs_test = jax.block_until_ready(attention_forward(x, scope, False, weight, bias))

    ref_train = _reference(x, scope, True, weight, bias, query)
    ref_test = _reference(x, scope, False, weight, bias)
    # bf16 matmul operands (f32 accumulation) -> slightly looser tolerance than pure f32.
    np.testing.assert_allclose(np.asarray(logits_train), np.asarray(ref_train),
                               rtol=2e-2, atol=2e-2)
    np.testing.assert_allclose(np.asarray(probs_test), np.asarray(ref_test),
                               rtol=2e-2, atol=2e-2)

    print("KERNEL_OK")
</pallas_src>

<mosaic_0001>
module attributes {stable_mosaic.version = 11 : i64} {
  func.func @_train_kernel(%arg0: i32, %arg1: i32, %arg2: memref<1xi32, #tpu.memory_space<smem>>, %arg3: memref<1xi32, #tpu.memory_space<smem>>, %arg4: memref<128x1xi32, #tpu.memory_space<vmem>>, %arg5: memref<128x1xi32, #tpu.memory_space<vmem>>, %arg6: memref<1x128xf32, #tpu.memory_space<vmem>>, %arg7: memref<128x128xbf16, #tpu.memory_space<vmem>>, %arg8: memref<128x128xbf16, #tpu.memory_space<vmem>>, %arg9: memref<1x128xf32, #tpu.memory_space<vmem>>, %arg10: memref<128x128xf32, #tpu.memory_space<vmem>>, %arg11: memref<128x1xf32, #tpu.memory_space<vmem>>, %arg12: memref<128x1xf32, #tpu.memory_space<vmem>>, %arg13: memref<128x128xf32, #tpu.memory_space<vmem>>) attributes {dimension_semantics = [#tpu.dimension_semantics<parallel>, #tpu.dimension_semantics<arbitrary>], iteration_bounds = array<i64: 1, 1>, scalar_prefetch = 2 : i64, scratch_operands = 3 : i64, tpu.core_type = #tpu.core_type<tc>, window_params = [{transform_indices = @transform_0, window_bounds = array<i64: 128, 1>}, {transform_indices = @transform_1, window_bounds = array<i64: 128, 1>}, {transform_indices = @transform_2, window_bounds = array<i64: 1, 128>}, {transform_indices = @transform_3, window_bounds = array<i64: 128, 128>}, {pipeline_mode = #tpu.pipeline_mode<synchronous>, transform_indices = @transform_4, window_bounds = array<i64: 128, 128>}, {pipeline_mode = #tpu.pipeline_mode<synchronous>, transform_indices = @transform_5, window_bounds = array<i64: 1, 128>}, {transform_indices = @transform_6, window_bounds = array<i64: 128, 128>}]} {
    %c0_i32 = arith.constant 0 : i32
    %0 = arith.cmpi eq, %arg1, %c0_i32 : i32
    %1 = arith.extui %0 : i1 to i32
    %c0_i32_0 = arith.constant 0 : i32
    %2 = arith.cmpi ne, %1, %c0_i32_0 : i32
    scf.if %2 {
      %cst = arith.constant 0xFF800000 : f32
      %17 = vector.broadcast %cst : f32 to vector<128x1xf32>
      %c0 = arith.constant 0 : index
      %c0_5 = arith.constant 0 : index
      %18 = vector.load %arg11[%c0, %c0_5] : memref<128x1xf32, #tpu.memory_space<vmem>>, vector<128x1xf32>
      tpu.vector_store %arg11[%c0, %c0_5], %17 {strides = array<i32>} : memref<128x1xf32, #tpu.memory_space<vmem>>, vector<128x1xf32>,
      %cst_6 = arith.constant 0.000000e+00 : f32
      %19 = vector.broadcast %cst_6 : f32 to vector<128x1xf32>
      %c0_7 = arith.constant 0 : index
      %c0_8 = arith.constant 0 : index
      %20 = vector.load %arg12[%c0_7, %c0_8] : memref<128x1xf32, #tpu.memory_space<vmem>>, vector<128x1xf32>
      tpu.vector_store %arg12[%c0_7, %c0_8], %19 {strides = array<i32>} : memref<128x1xf32, #tpu.memory_space<vmem>>, vector<128x1xf32>,
      %cst_9 = arith.constant 0.000000e+00 : f32
      %21 = vector.broadcast %cst_9 : f32 to vector<128x128xf32>
      %c0_10 = arith.constant 0 : index
      %c0_11 = arith.constant 0 : index
      %22 = vector.load %arg13[%c0_10, %c0_11] : memref<128x128xf32, #tpu.memory_space<vmem>>, vector<128x128xf32>
      tpu.vector_store %arg13[%c0_10, %c0_11], %21 {strides = array<i32>} : memref<128x128xf32, #tpu.memory_space<vmem>>, vector<128x128xf32>,
    } else {
    }
    %c128_i32 = arith.constant 128 : i32
    %3 = arith.muli %arg1, %c128_i32 : i32
    %4 = arith.index_cast %arg0 : i32 to index
    %5 = memref.load %arg3[%4] : memref<1xi32, #tpu.memory_space<smem>>
    %6 = arith.cmpi slt, %3, %5 : i32
    %c128_i32_1 = arith.constant 128 : i32
    %7 = arith.addi %3, %c128_i32_1 : i32
    %8 = arith.index_cast %arg0 : i32 to index
    %9 = memref.load %arg2[%8] : memref<1xi32, #tpu.memory_space<smem>>
    %10 = arith.cmpi sgt, %7, %9 : i32
    %11 = arith.andi %6, %10 : i1
    %12 = arith.extui %11 : i1 to i32
    %c0_i32_2 = arith.constant 0 : i32
    %13 = arith.cmpi ne, %12, %c0_i32_2 : i32
    scf.if %13 {
      %17 = tpu.iota {dimensions = array<i32: 1>} : vector<128x128xi32>
      %18 = vector.broadcast %3 : i32 to vector<128x128xi32>
      %19 = arith.addi %18, %17 : vector<128x128xi32>
      %c0 = arith.constant 0 : index
      %c0_5 = arith.constant 0 : index
      %20 = vector.load %arg4[%c0, %c0_5] : memref<128x1xi32, #tpu.memory_space<vmem>>, vector<128x1xi32>
      %21 = vector.broadcast %20 : vector<128x1xi32> to vector<128x128xi32>
      %22 = arith.cmpi sge, %19, %21 : vector<128x128xi32>
      %c0_6 = arith.constant 0 : index
      %c0_7 = arith.constant 0 : index
      %23 = vector.load %arg5[%c0_6, %c0_7] : memref<128x1xi32, #tpu.memory_space<vmem>>, vector<128x1xi32>
      %24 = vector.broadcast %23 : vector<128x1xi32> to vector<128x128xi32>
      %25 = arith.cmpi slt, %19, %24 : vector<128x128xi32>
      %26 = arith.andi %22, %25 : vector<128x128xi1>
      %c0_8 = arith.constant 0 : index
      %c0_9 = arith.constant 0 : index
      %27 = vector.load %arg6[%c0_8, %c0_9] : memref<1x128xf32, #tpu.memory_space<vmem>>, vector<1x128xf32>
      %cst = arith.constant 0xFF800000 : f32
      %28 = vector.shape_cast %27 : vector<1x128xf32> to vector<1x128xf32>
      %29 = vector.broadcast %28 : vector<1x128xf32> to vector<128x128xf32>
      %30 = vector.broadcast %cst : f32 to vector<128x128xf32>
      %31 = arith.select %26, %29, %30 : vector<128x128xi1>, vector<128x128xf32>
      %c0_10 = arith.constant 0 : index
      %c0_11 = arith.constant 0 : index
      %32 = vector.load %arg11[%c0_10, %c0_11] : memref<128x1xf32, #tpu.memory_space<vmem>>, vector<128x1xf32>
      %cst_12 = arith.constant dense<0xFF800000> : vector<128xf32>
      %33 = vector.multi_reduction <maximumf>, %31, %cst_12 [1] : vector<128x128xf32> to vector<128xf32>
      %34 = vector.shape_cast %33 : vector<128xf32> to vector<128x1xf32>
      %35 = arith.maximumf %32, %34 : vector<128x1xf32>
      %cst_13 = arith.constant 0xFF800000 : f32
      %36 = vector.broadcast %cst_13 : f32 to vector<128x1xf32>
      %37 = arith.cmpf oeq, %35, %36 : vector<128x1xf32>
      %cst_14 = arith.constant 0.000000e+00 : f32
      %38 = vector.broadcast %cst_14 : f32 to vector<128x1xf32>
      %39 = arith.select %37, %38, %35 : vector<128x1xi1>, vector<128x1xf32>
      %40 = arith.subf %32, %39 : vector<128x1xf32>
      %41 = math.exp %40 : vector<128x1xf32>
      %42 = vector.broadcast %39 : vector<128x1xf32> to vector<128x128xf32>
      %43 = arith.subf %31, %42 : vector<128x128xf32>
      %44 = math.exp %43 : vector<128x128xf32>
      %c0_15 = arith.constant 0 : index
      %c0_16 = arith.constant 0 : index
      %45 = vector.load %arg12[%c0_15, %c0_16] : memref<128x1xf32, #tpu.memory_space<vmem>>, vector<128x1xf32>
      %46 = arith.mulf %41, %45 : vector<128x1xf32>
      %cst_17 = arith.constant dense<0.000000e+00> : vector<128xf32>
      %47 = vector.multi_reduction <add>, %44, %cst_17 [1] : vector<128x128xf32> to vector<128xf32>
      %48 = vector.shape_cast %47 : vector<128xf32> to vector<128x1xf32>
      %49 = arith.addf %46, %48 : vector<128x1xf32>
      %c0_18 = arith.constant 0 : index
      %c0_19 = arith.constant 0 : index
      %50 = vector.load %arg12[%c0_18, %c0_19] : memref<128x1xf32, #tpu.memory_space<vmem>>, vector<128x1xf32>
      tpu.vector_store %arg12[%c0_18, %c0_19], %49 {strides = array<i32>} : memref<128x1xf32, #tpu.memory_space<vmem>>, vector<128x1xf32>,
      %c0_20 = arith.constant 0 : index
      %c0_21 = arith.constant 0 : index
      %51 = vector.load %arg13[%c0_20, %c0_21] : memref<128x128xf32, #tpu.memory_space<vmem>>, vector<128x128xf32>
      %52 = vector.broadcast %41 : vector<128x1xf32> to vector<128x128xf32>
      %53 = arith.mulf %52, %51 : vector<128x128xf32>
      %54 = arith.truncf %44 : vector<128x128xf32> to vector<128x128xbf16>
      %c0_22 = arith.constant 0 : index
      %c0_23 = arith.constant 0 : index
      %55 = vector.load %arg7[%c0_22, %c0_23] : memref<128x128xbf16, #tpu.memory_space<vmem>>, vector<128x128xbf16>
      %cst_24 = arith.constant dense<0.000000e+00> : vector<128x128xf32>
      %56 = tpu.matmul %54, %55, %cst_24 {dimension_numbers = #tpu.dot_dimension_numbers<[1], [0], [0], [1], [0, 0, 1, 1], [], []>} : vector<128x128xbf16>, vector<128x128xbf16>, vector<128x128xf32> -> vector<128x128xf32>
      %57 = arith.addf %53, %56 : vector<128x128xf32>
      %c0_25 = arith.constant 0 : index
      %c0_26 = arith.constant 0 : index
      %58 = vector.load %arg13[%c0_25, %c0_26] : memref<128x128xf32, #tpu.memory_space<vmem>>, vector<128x128xf32>
      tpu.vector_store %arg13[%c0_25, %c0_26], %57 {strides = array<i32>} : memref<128x128xf32, #tpu.memory_space<vmem>>, vector<128x128xf32>,
      %c0_27 = arith.constant 0 : index
      %c0_28 = arith.constant 0 : index
      %59 = vector.load %arg11[%c0_27, %c0_28] : memref<128x1xf32, #tpu.memory_space<vmem>>, vector<128x1xf32>
      tpu.vector_store %arg11[%c0_27, %c0_28], %35 {strides = array<i32>} : memref<128x1xf32, #tpu.memory_space<vmem>>, vector<128x1xf32>,
    } else {
    }
    %c0_i32_3 = arith.constant 0 : i32
    %14 = arith.cmpi eq, %arg1, %c0_i32_3 : i32
    %15 = arith.extui %14 : i1 to i32
    %c0_i32_4 = arith.constant 0 : i32
    %16 = arith.cmpi ne, %15, %c0_i32_4 : i32
    scf.if %16 {
      %c0 = arith.constant 0 : index
      %c0_5 = arith.constant 0 : index
      %17 = vector.load %arg12[%c0, %c0_5] : memref<128x1xf32, #tpu.memory_space<vmem>>, vector<128x1xf32>
      %cst = arith.constant 0.000000e+00 : f32
      %18 = vector.broadcast %cst : f32 to vector<128x1xf32>
      %19 = arith.cmpf ogt, %17, %18 : vector<128x1xf32>
      %c0_6 = arith.constant 0 : index
      %c0_7 = arith.constant 0 : index
      %20 = vector.load %arg12[%c0_6, %c0_7] : memref<128x1xf32, #tpu.memory_space<vmem>>, vector<128x1xf32>
      %cst_8 = arith.constant 1.000000e+00 : f32
      %21 = vector.broadcast %cst_8 : f32 to vector<128x1xf32>
      %22 = arith.select %19, %20, %21 : vector<128x1xi1>, vector<128x1xf32>
      %23 = tpu.reciprocal %22 {approx = true} : vector<128x1xf32> -> vector<128x1xf32>
      %c0_9 = arith.constant 0 : index
      %c0_10 = arith.constant 0 : index
      %24 = vector.load %arg13[%c0_9, %c0_10] : memref<128x128xf32, #tpu.memory_space<vmem>>, vector<128x128xf32>
      %25 = vector.broadcast %23 : vector<128x1xf32> to vector<128x128xf32>
      %26 = arith.mulf %24, %25 : vector<128x128xf32>
      %27 = arith.truncf %26 : vector<128x128xf32> to vector<128x128xbf16>
      %c0_11 = arith.constant 0 : index
      %c0_12 = arith.constant 0 : index
      %28 = vector.load %arg8[%c0_11, %c0_12] : memref<128x128xbf16, #tpu.memory_space<vmem>>, vector<128x128xbf16>
      %cst_13 = arith.constant dense<0.000000e+00> : vector<128x128xf32>
      %29 = tpu.matmul %27, %28, %cst_13 {dimension_numbers = #tpu.dot_dimension_numbers<[1], [1], [0], [0], [0, 0, 1, 0], [], []>} : vector<128x128xbf16>, vector<128x128xbf16>, vector<128x128xf32> -> vector<128x128xf32>
      %c0_14 = arith.constant 0 : index
      %c0_15 = arith.constant 0 : index
      %30 = vector.load %arg9[%c0_14, %c0_15] : memref<1x128xf32, #tpu.memory_space<vmem>>, vector<1x128xf32>
      %31 = vector.broadcast %30 : vector<1x128xf32> to vector<128x128xf32>
      %32 = arith.addf %29, %31 : vector<128x128xf32>
      %c0_16 = arith.constant 0 : index
      %c0_17 = arith.constant 0 : index
      %33 = vector.load %arg10[%c0_16, %c0_17] : memref<128x128xf32, #tpu.memory_space<vmem>>, vector<128x128xf32>
      tpu.vector_store %arg10[%c0_16, %c0_17], %32 {strides = array<i32>} : memref<128x128xf32, #tpu.memory_space<vmem>>, vector<128x128xf32>,
    } else {
    }
    return
  }
  func.func @transform_0(%arg0: i32, %arg1: i32, %arg2: memref<1xi32, #tpu.memory_space<smem>>, %arg3: memref<1xi32, #tpu.memory_space<smem>>) -> (i32, i32) {
    %c0_i32 = arith.constant 0 : i32
    %c0_i32_0 = arith.constant 0 : i32
    return %arg0, %c0_i32 : i32, i32
  }
  func.func @transform_1(%arg0: i32, %arg1: i32, %arg2: memref<1xi32, #tpu.memory_space<smem>>, %arg3: memref<1xi32, #tpu.memory_space<smem>>) -> (i32, i32) {
    %c0_i32 = arith.constant 0 : i32
    %c0_i32_0 = arith.constant 0 : i32
    return %arg0, %c0_i32 : i32, i32
  }
  func.func @transform_2(%arg0: i32, %arg1: i32, %arg2: memref<1xi32, #tpu.memory_space<smem>>, %arg3: memref<1xi32, #tpu.memory_space<smem>>) -> (i32, i32) {
    %c0_i32 = arith.constant 0 : i32
    %c0_i32_0 = arith.constant 0 : i32
    return %c0_i32, %arg1 : i32, i32
  }
  func.func @transform_3(%arg0: i32, %arg1: i32, %arg2: memref<1xi32, #tpu.memory_space<smem>>, %arg3: memref<1xi32, #tpu.memory_space<smem>>) -> (i32, i32) {
    %c0_i32 = arith.constant 0 : i32
    %c0_i32_0 = arith.constant 0 : i32
    return %arg1, %c0_i32 : i32, i32
  }
  func.func @transform_4(%arg0: i32, %arg1: i32, %arg2: memref<1xi32, #tpu.memory_space<smem>>, %arg3: memref<1xi32, #tpu.memory_space<smem>>) -> (i32, i32) {
    %c0_i32 = arith.constant 0 : i32
    %c0_i32_0 = arith.constant 0 : i32
    %c0_i32_1 = arith.constant 0 : i32
    return %c0_i32, %c0_i32_0 : i32, i32
  }
  func.func @transform_5(%arg0: i32, %arg1: i32, %arg2: memref<1xi32, #tpu.memory_space<smem>>, %arg3: memref<1xi32, #tpu.memory_space<smem>>) -> (i32, i32) {
    %c0_i32 = arith.constant 0 : i32
    %c0_i32_0 = arith.constant 0 : i32
    %c0_i32_1 = arith.constant 0 : i32
    return %c0_i32, %c0_i32_0 : i32, i32
  }
  func.func @transform_6(%arg0: i32, %arg1: i32, %arg2: memref<1xi32, #tpu.memory_space<smem>>, %arg3: memref<1xi32, #tpu.memory_space<smem>>) -> (i32, i32) {
    %c0_i32 = arith.constant 0 : i32
    %c0_i32_0 = arith.constant 0 : i32
    return %arg0, %c0_i32 : i32, i32
  }
}

</mosaic_0001>

<bundles_post_ra>
// kernel: tpu_custom_call.1
= control target key start
LH: loop header
LB: loop body
LE: loop exit
PB: predicated region body
PF: predicated region fallthrough
CT: control target
= control target key end

     0   :  { %15 = vsyncpa [#allocation9], 0  ;;  %vm33_vm0 = vcmask 7168   ;;  %v1675_v0 = vmov -inf   ;;  %v1676_v1 = vmov 0.0   ;;  %s2313_s0 = inlined_call_operand.<no memory space> [shape: s32[1], index: 0, kind: input, shape index: {}]   ;;  %s2314_s1 = inlined_call_operand.<no memory space> [shape: s32[1], index: 1, kind: input, shape index: {}]   ;;  %s2315_s2 = inlined_call_operand.vmem [shape: s32[128,1], index: 2, kind: input, shape index: {}]   ;;  %s2316_s3 = inlined_call_operand.vmem [shape: s32[128,1], index: 3, kind: input, shape index: {}]   ;;  %s2317_s4 = inlined_call_operand.vmem [shape: f32[1,128], index: 4, kind: input, shape index: {}]   ;;  %s2318_s5 = inlined_call_operand.vmem [shape: bf16[128,128], index: 5, kind: input, shape index: {}]   ;;  %s2319_s6 = inlined_call_operand.vmem [shape: bf16[128,128], index: 6, kind: input, shape index: {}]   ;;  %s2320_s7 = inlined_call_operand.vmem [shape: f32[1,128], index: 7, kind: input, shape index: {}]   ;;  %s2321_s8 = inlined_call_operand.hbm [shape: f32[128,128], index: 8, kind: output, shape index: {}]  }
   0x1   :  { %p1380_p0 = scmp.gt.s32.totalorder %s2314_s1, 0  ;;  %p1381_p1 = scmp.lt.s32.totalorder %s2313_s0, 128  ;;  %34 = vst.msk [vmem:[#allocation2] sm:$0xff] %vm33_vm0, %v1675_v0  ;;  %35 = vst.msk [vmem:[#allocation2 + $0x8] sm:$0xff] %vm33_vm0, %v1675_v0 }
   0x2   :  { %36 = vst.msk [vmem:[#allocation2 + $0x10] sm:$0xff] %vm33_vm0, %v1675_v0  ;;  %37 = vst.msk [vmem:[#allocation2 + $0x18] sm:$0xff] %vm33_vm0, %v1675_v0 }
   0x3   :  { %38 = vst.msk [vmem:[#allocation2 + $0x20] sm:$0xff] %vm33_vm0, %v1675_v0  ;;  %39 = vst.msk [vmem:[#allocation2 + $0x28] sm:$0xff] %vm33_vm0, %v1675_v0  ;;  %p1757_p2 = pnand %p1381_p1, %p1380_p0 }
   0x4   :  { %40 = vst.msk [vmem:[#allocation2 + $0x30] sm:$0xff] %vm33_vm0, %v1675_v0  ;;  %41 = vst.msk [vmem:[#allocation2 + $0x38] sm:$0xff] %vm33_vm0, %v1675_v0  ;;  %v104_v2 = vld [vmem:[%s2315_s2 + $0x40] sm:$0xff] (!%p1757_p2)  ;;  %v1677_v4 = vmov (!%p1757_p2), 0   ;;  %v105_v5 = vld [vmem:[%s2315_s2 + $0x48] sm:$0xff] (!%p1757_p2)  ;;  %v92_v37 = vlaneseq (!%p1757_p2) }
   0x5   :  { %42 = vst.msk [vmem:[#allocation2 + $0x40] sm:$0xff] %vm33_vm0, %v1675_v0  ;;  %43 = vst.msk [vmem:[#allocation2 + $0x48] sm:$0xff] %vm33_vm0, %v1675_v0  ;;  %v96_v3 = vld [vmem:[%s2315_s2] sm:$0xff] (!%p1757_p2)  ;;  %1536 = vset.pattern.permute.xlu1 (!%p1757_p2), %v1677_v4  ;;  %1535 = vset.pattern.permute.xlu0 (!%p1757_p2), %v1677_v4  ;;  %v97_v6 = vld [vmem:[%s2315_s2 + $0x8] sm:$0xff] (!%p1757_p2) }
   0x6   :  { %44 = vst.msk [vmem:[#allocation2 + $0x50] sm:$0xff] %vm33_vm0, %v1675_v0  ;;  %45 = vst.msk [vmem:[#allocation2 + $0x58] sm:$0xff] %vm33_vm0, %v1675_v0  ;;  %137 = vperm.xlu1 (!%p1757_p2), %1536, %v104_v2   ;;  %113 = vperm.xlu0 (!%p1757_p2), %1535, %v96_v3   ;;  %v177_v7 = vld [vmem:[%s2316_s3 + $0x8] sm:$0xff] (!%p1757_p2)  ;;  %v176_v8 = vld [vmem:[%s2316_s3] sm:$0xff] (!%p1757_p2)  ;;  %v1875_v40 = vand.u32 (!%p1757_p2), 127, %v92_v37 }
   0x7   :  { %46 = vst.msk [vmem:[#allocation2 + $0x60] sm:$0xff] %vm33_vm0, %v1675_v0  ;;  %47 = vst.msk [vmem:[#allocation2 + $0x68] sm:$0xff] %vm33_vm0, %v1675_v0  ;;  %v185_v9 = vld [vmem:[%s2316_s3 + $0x48] sm:$0xff] (!%p1757_p2)  ;;  %v184_v10 = vld [vmem:[%s2316_s3 + $0x40] sm:$0xff] (!%p1757_p2) }
   0x8   :  { %48 = vst.msk [vmem:[#allocation2 + $0x70] sm:$0xff] %vm33_vm0, %v1675_v0  ;;  %49 = vst.msk [vmem:[#allocation2 + $0x78] sm:$0xff] %vm33_vm0, %v1675_v0  ;;  %v99_v11 = vld [vmem:[%s2315_s2 + $0x18] sm:$0xff] (!%p1757_p2)  ;;  %v98_v12 = vld [vmem:[%s2315_s2 + $0x10] sm:$0xff] (!%p1757_p2) }
   0x9   :  { %50 = vst.msk [vmem:[#allocation3] sm:$0xff] %vm33_vm0, %v1676_v1  ;;  %51 = vst.msk [vmem:[#allocation3 + $0x8] sm:$0xff] %vm33_vm0, %v1676_v1  ;;  %v107_v13 = vld [vmem:[%s2315_s2 + $0x58] sm:$0xff] (!%p1757_p2)  ;;  %v106_v14 = vld [vmem:[%s2315_s2 + $0x50] sm:$0xff] (!%p1757_p2) }
   0xa   :  { %52 = vst.msk [vmem:[#allocation3 + $0x10] sm:$0xff] %vm33_vm0, %v1676_v1  ;;  %53 = vst.msk [vmem:[#allocation3 + $0x18] sm:$0xff] %vm33_vm0, %v1676_v1  ;;  %140 = vperm.xlu1 (!%p1757_p2), %1536, %v105_v5   ;;  %116 = vperm.xlu0 (!%p1757_p2), %1535, %v97_v6   ;;  %v179_v15 = vld [vmem:[%s2316_s3 + $0x18] sm:$0xff] (!%p1757_p2)  ;;  %v178_v16 = vld [vmem:[%s2316_s3 + $0x10] sm:$0xff] (!%p1757_p2) }
   0xb   :  { %54 = vst.msk [vmem:[#allocation3 + $0x20] sm:$0xff] %vm33_vm0, %v1676_v1  ;;  %55 = vst.msk [vmem:[#allocation3 + $0x28] sm:$0xff] %vm33_vm0, %v1676_v1  ;;  %v187_v17 = vld [vmem:[%s2316_s3 + $0x58] sm:$0xff] (!%p1757_p2)  ;;  %v186_v18 = vld [vmem:[%s2316_s3 + $0x50] sm:$0xff] (!%p1757_p2) }
   0xc   :  { %56 = vst.msk [vmem:[#allocation3 + $0x30] sm:$0xff] %vm33_vm0, %v1676_v1  ;;  %57 = vst.msk [vmem:[#allocation3 + $0x38] sm:$0xff] %vm33_vm0, %v1676_v1  ;;  %v101_v19 = vld [vmem:[%s2315_s2 + $0x28] sm:$0xff] (!%p1757_p2)  ;;  %v100_v20 = vld [vmem:[%s2315_s2 + $0x20] sm:$0xff] (!%p1757_p2) }
   0xd   :  { %58 = vst.msk [vmem:[#allocation3 + $0x40] sm:$0xff] %vm33_vm0, %v1676_v1  ;;  %59 = vst.msk [vmem:[#allocation3 + $0x48] sm:$0xff] %vm33_vm0, %v1676_v1  ;;  %v109_v21 = vld [vmem:[%s2315_s2 + $0x68] sm:$0xff] (!%p1757_p2)  ;;  %v108_v22 = vld [vmem:[%s2315_s2 + $0x60] sm:$0xff] (!%p1757_p2) }
   0xe   :  { %60 = vst.msk [vmem:[#allocation3 + $0x50] sm:$0xff] %vm33_vm0, %v1676_v1  ;;  %61 = vst.msk [vmem:[#allocation3 + $0x58] sm:$0xff] %vm33_vm0, %v1676_v1  ;;  %196 = vperm.xlu1 (!%p1757_p2), %1536, %v177_v7   ;;  %193 = vperm.xlu0 (!%p1757_p2), %1535, %v176_v8   ;;  %v181_v23 = vld [vmem:[%s2316_s3 + $0x28] sm:$0xff] (!%p1757_p2)  ;;  %v180_v24 = vld [vmem:[%s2316_s3 + $0x20] sm:$0xff] (!%p1757_p2) }
   0xf   :  { %62 = vst.msk [vmem:[#allocation3 + $0x60] sm:$0xff] %vm33_vm0, %v1676_v1  ;;  %63 = vst.msk [vmem:[#allocation3 + $0x68] sm:$0xff] %vm33_vm0, %v1676_v1  ;;  %v189_v25 = vld [vmem:[%s2316_s3 + $0x68] sm:$0xff] (!%p1757_p2)  ;;  %v188_v26 = vld [vmem:[%s2316_s3 + $0x60] sm:$0xff] (!%p1757_p2) }
  0x10   :  { %64 = vst.msk [vmem:[#allocation3 + $0x70] sm:$0xff] %vm33_vm0, %v1676_v1  ;;  %65 = vst.msk [vmem:[#allocation3 + $0x78] sm:$0xff] %vm33_vm0, %v1676_v1  ;;  %v103_v27 = vld [vmem:[%s2315_s2 + $0x38] sm:$0xff] (!%p1757_p2)  ;;  %v102_v28 = vld [vmem:[%s2315_s2 + $0x30] sm:$0xff] (!%p1757_p2) }
  0x11   :  { %66 = vst [vmem:[#allocation4] sm:$0xff] %v1676_v1  ;;  %67 = vst [vmem:[#allocation4 + $0x8] sm:$0xff] %v1676_v1  ;;  %v111_v29 = vld [vmem:[%s2315_s2 + $0x78] sm:$0xff] (!%p1757_p2)  ;;  %v110_v30 = vld [vmem:[%s2315_s2 + $0x70] sm:$0xff] (!%p1757_p2) }
  0x12   :  { %68 = vst [vmem:[#allocation4 + $0x10] sm:$0xff] %v1676_v1  ;;  %69 = vst [vmem:[#allocation4 + $0x18] sm:$0xff] %v1676_v1  ;;  %91 = sbr.rel (%p1757_p2) target bundleno = 707 (0x2c3), region = 33  ;;  %220 = vperm.xlu1 (!%p1757_p2), %1536, %v185_v9   ;;  %217 = vperm.xlu0 (!%p1757_p2), %1535, %v184_v10   ;;  %v183_v31 = vld [vmem:[%s2316_s3 + $0x38] sm:$0xff] (!%p1757_p2)  ;;  %v182_v32 = vld [vmem:[%s2316_s3 + $0x30] sm:$0xff] (!%p1757_p2) }
  0x13   :  { %70 = vst [vmem:[#allocation4 + $0x20] sm:$0xff] %v1676_v1  ;;  %71 = vst [vmem:[#allocation4 + $0x28] sm:$0xff] %v1676_v1  ;;  %v191_v33 = vld [vmem:[%s2316_s3 + $0x78] sm:$0xff] (!%p1757_p2)  ;;  %v190_v34 = vld [vmem:[%s2316_s3 + $0x70] sm:$0xff] (!%p1757_p2) }
  0x14   :  { %72 = vst [vmem:[#allocation4 + $0x30] sm:$0xff] %v1676_v1  ;;  %73 = vst [vmem:[#allocation4 + $0x38] sm:$0xff] %v1676_v1  ;;  %v1880_v43 = vld [vmem:[%s2317_s4] ss:$0 sm:$0xff] (!%p1757_p2)  ;;  %v1538_v37 = vld [vmem:[%s2318_s5 + $0x8] sm:$0xff] (!%p1757_p2)  }
  0x15   :  { %74 = vst [vmem:[#allocation4 + $0x40] sm:$0xff] %v1676_v1  ;;  %75 = vst [vmem:[#allocation4 + $0x48] sm:$0xff] %v1676_v1 }
  0x16   :  { %76 = vst [vmem:[#allocation4 + $0x50] sm:$0xff] %v1676_v1  ;;  %77 = vst [vmem:[#allocation4 + $0x58] sm:$0xff] %v1676_v1  ;;  %122 = vperm.xlu1 (!%p1757_p2), %1536, %v99_v11   ;;  %119 = vperm.xlu0 (!%p1757_p2), %1535, %v98_v12  }
  0x17   :  { %78 = vst [vmem:[#allocation4 + $0x60] sm:$0xff] %v1676_v1  ;;  %79 = vst [vmem:[#allocation4 + $0x68] sm:$0xff] %v1676_v1 }
  0x18   :  { %80 = vst [vmem:[#allocation4 + $0x70] sm:$0xff] %v1676_v1  ;;  %81 = vst [vmem:[#allocation4 + $0x78] sm:$0xff] %v1676_v1 }
  0x1a   :  { %146 = vperm.xlu1 %1536, %v107_v13   ;;  %143 = vperm.xlu0 %1535, %v106_v14  }
  0x1e   :  { %202 = vperm.xlu1 %1536, %v179_v15   ;;  %199 = vperm.xlu0 %1535, %v178_v16  }
  0x22   :  { %226 = vperm.xlu1 %1536, %v187_v17   ;;  %223 = vperm.xlu0 %1535, %v186_v18  }
  0x26   :  { %128 = vperm.xlu1 %1536, %v101_v19   ;;  %125 = vperm.xlu0 %1535, %v100_v20  }
  0x2a   :  { %152 = vperm.xlu1 %1536, %v109_v21   ;;  %149 = vperm.xlu0 %1535, %v108_v22   ;;  %v1978_v22 = vld [vmem:[#allocation2 + $0x8] sm:$0xff] }
  0x2e   :  { %208 = vperm.xlu1 %1536, %v181_v23   ;;  %205 = vperm.xlu0 %1535, %v180_v24   ;;  %v1980_v23 = vld [vmem:[#allocation2] sm:$0xff] }
  0x32   :  { %232 = vperm.xlu1 %1536, %v189_v25   ;;  %229 = vperm.xlu0 %1535, %v188_v26  }
  0x36   :  { %134 = vperm.xlu1 %1536, %v103_v27   ;;  %131 = vperm.xlu0 %1535, %v102_v28   ;;  %v1985_v28 = vld [vmem:[#allocation2 + $0x40] sm:$0xff] }
  0x3a   :  { %158 = vperm.xlu1 %1536, %v111_v29   ;;  %155 = vperm.xlu0 %1535, %v110_v30  }
  0x3e   :  { %214 = vperm.xlu1 %1536, %v183_v31   ;;  %211 = vperm.xlu0 %1535, %v182_v32   ;;  %v1537_v32 = vld [vmem:[%s2318_s5] sm:$0xff]  }
  0x3f   :  { %1432 = vmatprep.subr.bf16.mxu0 %v1537_v32  ;;  %1496 = vmatprep.subr.bf16.mxu1 %v1537_v32 }
  0x40   :  { %1433 = vmatpush3.bf16.msra.mxu0 %v1537_v32  ;;  %1504 = vmatpush3.bf16.msra.mxu1 %v1537_v32 }
  0x41   :  { %1434 = vmatprep.subr.bf16.mxu0 %v1538_v37  ;;  %1497 = vmatprep.subr.bf16.mxu1 %v1538_v37 }
  0x42   :  { %238 = vperm.xlu1 %1536, %v191_v33   ;;  %235 = vperm.xlu0 %1535, %v190_v34   ;;  %v1998_v34 = vld [vmem:[#allocation2 + $0x48] sm:$0xff] }
  0x44   :  { %1435 = vmatpush3.bf16.msra.mxu0 %v1538_v37  ;;  %1505 = vmatpush3.bf16.msra.mxu1 %v1538_v37 }
  0x85   :  { %v138_v35 = vpop.permute.xlu1 %137  ;;  %v114_v36 = vpop.permute.xlu0 %113 }
  0x86   :  { %vm160_vm4 = vcmp.ge.s32.totalorder %v1875_v40, %v114_v36  ;;  %vm168_vm7 = vcmp.ge.s32.totalorder %v1875_v40, %v138_v35 }
  0x89   :  { %v141_v38 = vpop.permute.xlu1 %140  ;;  %v117_v39 = vpop.permute.xlu0 %116 }
  0x8a   :  { %vm161_vm1 = vcmp.ge.s32.totalorder %v1875_v40, %v117_v39  ;;  %vm169_vm11 = vcmp.ge.s32.totalorder %v1875_v40, %v141_v38 }
  0x8d   :  { %v197_v41 = vpop.permute.xlu1 %196  ;;  %v194_v42 = vpop.permute.xlu0 %193 }
  0x8e   :  { %vm241_vm2 = vcmp.lt.s32.totalorder %v1875_v40, %v197_v41  ;;  %vm240_vm3 = vcmp.lt.s32.totalorder %v1875_v40, %v194_v42  ;;  %v2015_v41 = vld [vmem:[#allocation2 + $0x10] sm:$0xff]  ;;  %v2017_v42 = vld [vmem:[#allocation2 + $0x18] sm:$0xff] }
  0x8f   :  { %vm257_vm5 = vmand %vm161_vm1, %vm241_vm2 }
  0x90   :  { %v1887_v44 = vsel %vm257_vm5, %v1880_v43, -inf  ;;  %vm256_vm6 = vmand %vm160_vm4, %vm240_vm3 }
  0x91   :  { %v221_v45 = vpop.permute.xlu1 %220  ;;  %v218_v46 = vpop.permute.xlu0 %217  ;;  %313 = vmax.xlane.f32.xlu1 %v1887_v44  ;;  %v1891_v47 = vsel %vm256_vm6, %v1880_v43, -inf }
  0x92   :  { %vm248_vm8 = vcmp.lt.s32.totalorder %v1875_v40, %v218_v46  ;;  %311 = vmax.xlane.f32.xlu0 %v1891_v47  ;;  %vm249_vm9 = vcmp.lt.s32.totalorder %v1875_v40, %v221_v45 }
  0x93   :  { %vm264_vm10 = vmand %vm168_vm7, %vm248_vm8 }
  0x94   :  { %v1898_v48 = vsel %vm264_vm10, %v1880_v43, -inf  ;;  %vm265_vm12 = vmand %vm169_vm11, %vm249_vm9 }
  0x95   :  { %v123_v49 = vpop.permute.xlu1 %122  ;;  %v120_v50 = vpop.permute.xlu0 %119  ;;  %v1903_v53 = vsel %vm265_vm12, %v1880_v43, -inf }
  0x96   :  { %327 = vmax.xlane.f32.xlu0 %v1898_v48  ;;  %vm162_vm13 = vcmp.ge.s32.totalorder %v1875_v40, %v120_v50  ;;  %vm163_vm1 = vcmp.ge.s32.totalorder %v1875_v40, %v123_v49  ;;  %v1540_v49 = vld [vmem:[%s2318_s5 + $0x18] sm:$0xff]  }
  0x99   :  { %v147_v51 = vpop.permute.xlu1 %146  ;;  %v144_v52 = vpop.permute.xlu0 %143 }
  0x9a   :  { %329 = vmax.xlane.f32.xlu0 %v1903_v53  ;;  %vm170_vm4 = vcmp.ge.s32.totalorder %v1875_v40, %v144_v52  ;;  %vm171_vm7 = vcmp.ge.s32.totalorder %v1875_v40, %v147_v51  ;;  %v2024_v51 = vld [vmem:[#allocation2 + $0x50] sm:$0xff]  ;;  %v2027_v52 = vld [vmem:[#allocation2 + $0x58] sm:$0xff] }
  0x9d   :  { %v203_v54 = vpop.permute.xlu1 %202  ;;  %v200_v55 = vpop.permute.xlu0 %199 }
  0x9e   :  { %vm243_vm14 = vcmp.lt.s32.totalorder %v1875_v40, %v203_v54  ;;  %vm242_vm15 = vcmp.lt.s32.totalorder %v1875_v40, %v200_v55 }
  0x9f   :  { %vm258_vm2 = vmand %vm162_vm13, %vm242_vm15 }
  0xa0   :  { %v1911_v56 = vsel %vm258_vm2, %v1880_v43, -inf  ;;  %vm259_vm3 = vmand %vm163_vm1, %vm243_vm14 }
  0xa1   :  { %v227_v57 = vpop.permute.xlu1 %226  ;;  %v224_v58 = vpop.permute.xlu0 %223  ;;  %315 = vmax.xlane.f32.xlu1 %v1911_v56  ;;  %v1915_v59 = vsel %vm259_vm3, %v1880_v43, -inf }
  0xa2   :  { %vm251_vm5 = vcmp.lt.s32.totalorder %v1875_v40, %v227_v57  ;;  %vm250_vm6 = vcmp.lt.s32.totalorder %v1875_v40, %v224_v58  ;;  %317 = vmax.xlane.f32.xlu0 %v1915_v59 }
  0xa3   :  { %vm266_vm8 = vmand %vm170_vm4, %vm250_vm6 }
  0xa4   :  { %v1923_v60 = vsel %vm266_vm8, %v1880_v43, -inf  ;;  %vm267_vm9 = vmand %vm171_vm7, %vm251_vm5 }
  0xa5   :  { %v129_v61 = vpop.permute.xlu1 %128  ;;  %v126_v62 = vpop.permute.xlu0 %125  ;;  %331 = vmax.xlane.f32.xlu1 %v1923_v60  ;;  %v1927_v63 = vsel %vm267_vm9, %v1880_v43, -inf }
  0xa6   :  { %333 = vmax.xlane.f32.xlu0 %v1927_v63  ;;  %vm164_vm10 = vcmp.ge.s32.totalorder %v1875_v40, %v126_v62  ;;  %vm165_vm13 = vcmp.ge.s32.totalorder %v1875_v40, %v129_v61  ;;  %v1541_v62 = vld [vmem:[%s2318_s5 + $0x20] sm:$0xff]  }
  0xa9   :  { %v153_v0 = vpop.permute.xlu1 %152  ;;  %v150_v1 = vpop.permute.xlu0 %149 }
  0xaa   :  { %vm172_vm1 = vcmp.ge.s32.totalorder %v1875_v40, %v150_v1  ;;  %vm173_vm4 = vcmp.ge.s32.totalorder %v1875_v40, %v153_v0 }
  0xad   :  { %v209_v2 = vpop.permute.xlu1 %208  ;;  %v206_v3 = vpop.permute.xlu0 %205 }
  0xae   :  { %vm245_vm11 = vcmp.lt.s32.totalorder %v1875_v40, %v209_v2  ;;  %vm244_vm12 = vcmp.lt.s32.totalorder %v1875_v40, %v206_v3  ;;  %v1542_v3 = vld [vmem:[%s2318_s5 + $0x28] sm:$0xff]  }
  0xaf   :  { %vm260_vm14 = vmand %vm164_vm10, %vm244_vm12 }
  0xb0   :  { %v1935_v4 = vsel %vm260_vm14, %v1880_v43, -inf  ;;  %vm261_vm15 = vmand %vm165_vm13, %vm245_vm11 }
  0xb1   :  { %v233_v5 = vpop.permute.xlu1 %232  ;;  %v230_v6 = vpop.permute.xlu0 %229  ;;  %319 = vmax.xlane.f32.xlu1 %v1935_v4  ;;  %v1939_v7 = vsel %vm261_vm15, %v1880_v43, -inf }
  0xb2   :  { %vm253_vm2 = vcmp.lt.s32.totalorder %v1875_v40, %v233_v5  ;;  %vm252_vm3 = vcmp.lt.s32.totalorder %v1875_v40, %v230_v6  ;;  %321 = vmax.xlane.f32.xlu0 %v1939_v7  ;;  %v1543_v5 = vld [vmem:[%s2318_s5 + $0x30] sm:$0xff]   ;;  %v299_v6 = vld [vmem:[#allocation2 + $0x20] sm:$0xff] }
  0xb3   :  { %vm268_vm5 = vmand %vm172_vm1, %vm252_vm3 }
  0xb4   :  { %v1947_v8 = vsel %vm268_vm5, %v1880_v43, -inf  ;;  %vm269_vm6 = vmand %vm173_vm4, %vm253_vm2 }
  0xb5   :  { %v135_v9 = vpop.permute.xlu1 %134  ;;  %v132_v10 = vpop.permute.xlu0 %131  ;;  %335 = vmax.xlane.f32.xlu1 %v1947_v8  ;;  %v1951_v11 = vsel %vm269_vm6, %v1880_v43, -inf }
  0xb6   :  { %337 = vmax.xlane.f32.xlu0 %v1951_v11  ;;  %vm166_vm7 = vcmp.ge.s32.totalorder %v1875_v40, %v132_v10  ;;  %vm167_vm10 = vcmp.ge.s32.totalorder %v1875_v40, %v135_v9  ;;  %v2055_v9 = vld [vmem:[#allocation2 + $0x28] sm:$0xff]  ;;  %v1544_v10 = vld [vmem:[%s2318_s5 + $0x38] sm:$0xff]  }
  0xb9   :  { %v159_v12 = vpop.permute.xlu1 %158  ;;  %v156_v13 = vpop.permute.xlu0 %155 }
  0xba   :  { %vm174_vm13 = vcmp.ge.s32.totalorder %v1875_v40, %v156_v13  ;;  %vm175_vm1 = vcmp.ge.s32.totalorder %v1875_v40, %v159_v12 }
  0xbd   :  { %v215_v14 = vpop.permute.xlu1 %214  ;;  %v212_v15 = vpop.permute.xlu0 %211 }
  0xbe   :  { %vm247_vm8 = vcmp.lt.s32.totalorder %v1875_v40, %v215_v14  ;;  %vm246_vm9 = vcmp.lt.s32.totalorder %v1875_v40, %v212_v15 }
  0xbf   :  { %vm262_vm11 = vmand %vm166_vm7, %vm246_vm9 }
  0xc0   :  { %v1959_v16 = vsel %vm262_vm11, %v1880_v43, -inf  ;;  %vm263_vm12 = vmand %vm167_vm10, %vm247_vm8 }
  0xc1   :  { %v239_v17 = vpop.permute.xlu1 %238  ;;  %v236_v18 = vpop.permute.xlu0 %235  ;;  %323 = vmax.xlane.f32.xlu1 %v1959_v16  ;;  %v1963_v19 = vsel %vm263_vm12, %v1880_v43, -inf }
  0xc2   :  { %vm255_vm14 = vcmp.lt.s32.totalorder %v1875_v40, %v239_v17  ;;  %vm254_vm15 = vcmp.lt.s32.totalorder %v1875_v40, %v236_v18  ;;  %325 = vmax.xlane.f32.xlu0 %v1963_v19  ;;  %v1539_v40 = vld [vmem:[%s2318_s5 + $0x10] sm:$0xff]   ;;  %v2061_v17 = vld [vmem:[#allocation2 + $0x60] sm:$0xff]  ;;  %v2064_v18 = vld [vmem:[#allocation2 + $0x68] sm:$0xff] }
  0xc3   :  { %vm270_vm2 = vmand %vm174_vm13, %vm254_vm15  ;;  %1436 = vmatprep.subr.bf16.mxu0 %v1539_v40  ;;  %1498 = vmatprep.subr.bf16.mxu1 %v1539_v40 }
  0xc4   :  { %v1971_v20 = vsel %vm270_vm2, %v1880_v43, -inf  ;;  %vm271_vm3 = vmand %vm175_vm1, %vm255_vm14  ;;  %1437 = vmatpush3.bf16.msra.mxu0 %v1539_v40  ;;  %1506 = vmatpush3.bf16.msra.mxu1 %v1539_v40 }
  0xc5   :  { %339 = vmax.xlane.f32.xlu1 %v1971_v20  ;;  %v1975_v21 = vsel %vm271_vm3, %v1880_v43, -inf  ;;  %1438 = vmatprep.subr.bf16.mxu0 %v1540_v49 }
  0xc6   :  { %341 = vmax.xlane.f32.xlu0 %v1975_v21  ;;  %1499 = vmatprep.subr.bf16.mxu1 %v1540_v49 }
  0xc8   :  { %1439 = vmatpush3.bf16.msra.mxu0 %v1540_v49  ;;  %1507 = vmatpush3.bf16.msra.mxu1 %v1540_v49 }
  0xc9   :  { %1440 = vmatprep.subr.bf16.mxu0 %v1541_v62  ;;  %1500 = vmatprep.subr.bf16.mxu1 %v1541_v62 }
  0xcc   :  { %1441 = vmatpush3.bf16.msra.mxu0 %v1541_v62  ;;  %1508 = vmatpush3.bf16.msra.mxu1 %v1541_v62 }
  0xcd   :  { %1442 = vmatprep.subr.bf16.mxu0 %v1542_v3  ;;  %1501 = vmatprep.subr.bf16.mxu1 %v1542_v3 }
  0xd0   :  { %1443 = vmatpush3.bf16.msra.mxu0 %v1542_v3  ;;  %1509 = vmatpush3.bf16.msra.mxu1 %v1542_v3 }
  0xd1   :  { %1444 = vmatprep.subr.bf16.mxu0 %v1543_v5  ;;  %1502 = vmatprep.subr.bf16.mxu1 %v1543_v5 }
  0xd4   :  { %1445 = vmatpush3.bf16.msra.mxu0 %v1543_v5  ;;  %1510 = vmatpush3.bf16.msra.mxu1 %v1543_v5 }
  0xd5   :  { %1446 = vmatprep.subr.bf16.mxu0 %v1544_v10  ;;  %1503 = vmatprep.subr.bf16.mxu1 %v1544_v10 }
  0xd8   :  { %1447 = vmatpush3.bf16.msra.mxu0 %v1544_v10  ;;  %1511 = vmatpush3.bf16.msra.mxu1 %v1544_v10 }
 0x11e   :  { %v314_v24 = vpop.xlane.xlu1 %313 }
 0x11f   :  { %v344_v25 = vmax.f32 %v1978_v22, %v314_v24  ;;  %v312_v26 = vpop.xlane.xlu0 %311 }
 0x120   :  { %v343_v27 = vmax.f32 %v1980_v23, %v312_v26 }
 0x121   :  { %978 = vst.msk [vmem:[#allocation2 + $0x8] sm:$0xff] %vm33_vm0, %v344_v25  ;;  %vm360_vm4 = vcmp.eq.f32.partialorder %v344_v25, -inf }
 0x122   :  { %977 = vst.msk [vmem:[#allocation2] sm:$0xff] %vm33_vm0, %v343_v27  ;;  %v1988_v29 = vsel %vm360_vm4, 0.0, %v344_v25  ;;  %vm359_vm5 = vcmp.eq.f32.partialorder %v343_v27, -inf }
 0x123   :  { %v328_v30 = vpop.xlane.xlu0 %327  ;;  %446 = vperm.xlu0 %1535, %v1988_v29   ;;  %v1991_v31 = vsel %vm359_vm5, 0.0, %v343_v27  ;;  %v392_v37 = vsub.f32 %v1978_v22, %v1988_v29 }
 0x124   :  { %v351_v33 = vmax.f32 %v1985_v28, %v328_v30  ;;  %441 = vperm.xlu1 %1536, %v1991_v31  }
 0x125   :  { %v409_v40 = vmul.f32 1.442695, %v392_v37 }
 0x126   :  { %985 = vst.msk [vmem:[#allocation2 + $0x40] sm:$0xff] %vm33_vm0, %v351_v33  ;;  %vm367_vm6 = vcmp.eq.f32.partialorder %v351_v33, -inf }
 0x127   :  { %v330_v35 = vpop.xlane.xlu0 %329  ;;  %v2001_v36 = vsel %vm367_vm6, 0.0, %v351_v33  ;;  %1545 = vpow2.f32 %v409_v40 }
 0x128   :  { %v352_v38 = vmax.f32 %v1998_v34, %v330_v35  ;;  %481 = vperm.xlu1 %1536, %v2001_v36  }
 0x12a   :  { %986 = vst.msk [vmem:[#allocation2 + $0x48] sm:$0xff] %vm33_vm0, %v352_v38  ;;  %vm368_vm7 = vcmp.eq.f32.partialorder %v352_v38, -inf }
 0x12b   :  { %v2009_v39 = vsel %vm368_vm7, 0.0, %v352_v38  ;;  %v391_v38 = vsub.f32 %v1980_v23, %v1991_v31  ;;  %v2091_v31 = vld [vmem:[#allocation2 + $0x78] sm:$0xff] }
 0x12c   :  { %486 = vperm.xlu1 %1536, %v2009_v39  }
 0x12e   :  { %v316_v43 = vpop.xlane.xlu1 %315 }
 0x12f   :  { %v345_v45 = vmax.f32 %v2015_v41, %v316_v43  ;;  %v318_v46 = vpop.xlane.xlu0 %317 }
 0x130   :  { %v346_v50 = vmax.f32 %v2017_v42, %v318_v46  ;;  %v407_v46 = vmul.f32 1.442695, %v391_v38 }
 0x131   :  { %979 = vst.msk [vmem:[#allocation2 + $0x10] sm:$0xff] %vm33_vm0, %v345_v45  ;;  %vm361_vm8 = vcmp.eq.f32.partialorder %v345_v45, -inf }
 0x132   :  { %980 = vst.msk [vmem:[#allocation2 + $0x18] sm:$0xff] %vm33_vm0, %v346_v50  ;;  %v332_v54 = vpop.xlane.xlu1 %331  ;;  %v2030_v55 = vsel %vm361_vm8, 0.0, %v345_v45  ;;  %vm362_vm9 = vcmp.eq.f32.partialorder %v346_v50, -inf  ;;  %v301_v45 = vld [vmem:[#allocation2 + $0x30] sm:$0xff]  ;;  %1547 = vpow2.f32 %v407_v46 }
 0x133   :  { %v353_v57 = vmax.f32 %v2024_v51, %v332_v54  ;;  %v334_v58 = vpop.xlane.xlu0 %333  ;;  %451 = vperm.xlu0 %1535, %v2030_v55   ;;  %v2034_v61 = vsel %vm362_vm9, 0.0, %v346_v50  ;;  %v393_v49 = vsub.f32 %v2015_v41, %v2030_v55  ;;  %v302_v50 = vld [vmem:[#allocation2 + $0x38] sm:$0xff] }
 0x134   :  { %v354_v0 = vmax.f32 %v2027_v52, %v334_v58  ;;  %456 = vperm.xlu1 %1536, %v2034_v61   ;;  %v394_v22 = vsub.f32 %v2017_v42, %v2034_v61 }
 0x135   :  { %987 = vst.msk [vmem:[#allocation2 + $0x50] sm:$0xff] %vm33_vm0, %v353_v57  ;;  %vm369_vm10 = vcmp.eq.f32.partialorder %v353_v57, -inf  ;;  %v411_v23 = vmul.f32 1.442695, %v393_v49 }
 0x136   :  { %988 = vst.msk [vmem:[#allocation2 + $0x58] sm:$0xff] %vm33_vm0, %v354_v0  ;;  %v2043_v1 = vsel %vm369_vm10, 0.0, %v353_v57  ;;  %vm370_vm11 = vcmp.eq.f32.partialorder %v354_v0, -inf  ;;  %v413_v10 = vmul.f32 1.442695, %v394_v22 }
 0x137   :  { %491 = vperm.xlu0 %1535, %v2043_v1   ;;  %v2046_v2 = vsel %vm370_vm11, 0.0, %v354_v0  ;;  %v2088_v0 = vld [vmem:[#allocation2 + $0x70] sm:$0xff] }
 0x138   :  { %496 = vperm.xlu1 %1536, %v2046_v2  }
 0x13e   :  { %v320_v12 = vpop.xlane.xlu1 %319 }
 0x13f   :  { %v347_v13 = vmax.f32 %v299_v6, %v320_v12  ;;  %v322_v14 = vpop.xlane.xlu0 %321 }
 0x140   :  { %v348_v15 = vmax.f32 %v2055_v9, %v322_v14 }
 0x141   :  { %981 = vst.msk [vmem:[#allocation2 + $0x20] sm:$0xff] %vm33_vm0, %v347_v13  ;;  %vm363_vm12 = vcmp.eq.f32.partialorder %v347_v13, -inf }
 0x142   :  { %982 = vst.msk [vmem:[#allocation2 + $0x28] sm:$0xff] %vm33_vm0, %v348_v15  ;;  %v336_v24 = vpop.xlane.xlu1 %335  ;;  %v379_v25 = vsel %vm363_vm12, 0.0, %v347_v13  ;;  %vm364_vm13 = vcmp.eq.f32.partialorder %v348_v15, -inf }
 0x143   :  { %v355_v26 = vmax.f32 %v2061_v17, %v336_v24  ;;  %v338_v27 = vpop.xlane.xlu0 %337  ;;  %461 = vperm.xlu0 %1535, %v379_v25   ;;  %v2068_v30 = vsel %vm364_vm13, 0.0, %v348_v15  ;;  %v395_v43 = vsub.f32 %v299_v6, %v379_v25  ;;  %v399_v6 = vsub.f32 %v1985_v28, %v2001_v36 }
 0x144   :  { %v356_v32 = vmax.f32 %v2064_v18, %v338_v27  ;;  %466 = vperm.xlu1 %1536, %v2068_v30   ;;  %v396_v13 = vsub.f32 %v2055_v9, %v2068_v30  ;;  %v401_v9 = vsub.f32 %v2024_v51, %v2043_v1  ;;  %v2114_v30 = vpop.eup %1545  ;;  %v400_v51 = vsub.f32 %v1998_v34, %v2009_v39 }
 0x145   :  { %989 = vst.msk [vmem:[#allocation2 + $0x60] sm:$0xff] %vm33_vm0, %v355_v26  ;;  %vm371_vm14 = vcmp.eq.f32.partialorder %v355_v26, -inf  ;;  %v415_v29 = vmul.f32 1.442695, %v395_v43  ;;  %v423_v24 = vmul.f32 1.442695, %v399_v6 }
 0x146   :  { %990 = vst.msk [vmem:[#allocation2 + $0x68] sm:$0xff] %vm33_vm0, %v356_v32  ;;  %v2074_v33 = vsel %vm371_vm14, 0.0, %v355_v26  ;;  %vm372_vm15 = vcmp.eq.f32.partialorder %v356_v32, -inf  ;;  %v417_v26 = vmul.f32 1.442695, %v396_v13 }
 0x147   :  { %501 = vperm.xlu0 %1535, %v2074_v33   ;;  %v2077_v35 = vsel %vm372_vm15, 0.0, %v356_v32  ;;  %1549 = vpow2.f32 %v415_v29  ;;  %v2116_v32 = vpop.eup %1547  ;;  %v427_v37 = vmul.f32 1.442695, %v401_v9  ;;  %v403_v38 = vsub.f32 %v2061_v17, %v2074_v33 }
 0x148   :  { %506 = vperm.xlu1 %1536, %v2077_v35   ;;  %1551 = vpow2.f32 %v411_v23  ;;  %v425_v17 = vmul.f32 1.442695, %v400_v51  ;;  %v402_v33 = vsub.f32 %v2027_v52, %v2046_v2  ;;  %v404_v49 = vsub.f32 %v2064_v18, %v2077_v35 }
 0x14a   :  { %v429_v39 = vmul.f32 1.442695, %v402_v33  ;;  %v433_v52 = vmul.f32 1.442695, %v404_v49 }
 0x14e   :  { %v324_v54 = vpop.xlane.xlu1 %323 }
 0x14f   :  { %v349_v57 = vmax.f32 %v301_v45, %v324_v54  ;;  %v326_v58 = vpop.xlane.xlu0 %325 }
 0x150   :  { %v350_v62 = vmax.f32 %v302_v50, %v326_v58 }
 0x151   :  { %983 = vst.msk [vmem:[#allocation2 + $0x30] sm:$0xff] %vm33_vm0, %v349_v57  ;;  %vm365_vm1 = vcmp.eq.f32.partialorder %v349_v57, -inf  ;;  %v2124_v40 = vpop.eup %1549 }
 0x152   :  { %984 = vst.msk [vmem:[#allocation2 + $0x38] sm:$0xff] %vm33_vm0, %v350_v62  ;;  %v340_v41 = vpop.xlane.xlu1 %339  ;;  %v381_v55 = vsel %vm365_vm1, 0.0, %v349_v57  ;;  %vm366_vm2 = vcmp.eq.f32.partialorder %v350_v62, -inf  ;;  %v2126_v43 = vpop.eup %1551 }
 0x153   :  { %v357_v3 = vmax.f32 %v2088_v0, %v340_v41  ;;  %v342_v5 = vpop.xlane.xlu0 %341  ;;  %v397_v42 = vsub.f32 %v301_v45, %v381_v55  ;;  %471 = vperm.xlu0 %1535, %v381_v55   ;;  %v382_v61 = vsel %vm366_vm2, 0.0, %v350_v62  ;;  %v431_v45 = vmul.f32 1.442695, %v403_v38 }
 0x154   :  { %v358_v12 = vmax.f32 %v2091_v31, %v342_v5  ;;  %476 = vperm.xlu1 %1536, %v382_v61   ;;  %v398_v27 = vsub.f32 %v302_v50, %v382_v61 }
 0x155   :  { %991 = vst.msk [vmem:[#allocation2 + $0x70] sm:$0xff] %vm33_vm0, %v357_v3  ;;  %v419_v14 = vmul.f32 1.442695, %v397_v42  ;;  %vm373_vm3 = vcmp.eq.f32.partialorder %v357_v3, -inf }
 0x156   :  { %992 = vst.msk [vmem:[#allocation2 + $0x78] sm:$0xff] %vm33_vm0, %v358_v12  ;;  %v2102_v15 = vsel %vm373_vm3, 0.0, %v357_v3  ;;  %vm374_vm4 = vcmp.eq.f32.partialorder %v358_v12, -inf  ;;  %v421_v1 = vmul.f32 1.442695, %v398_v27 }
 0x157   :  { %1553 = vpow2.f32 %v419_v14  ;;  %v405_v28 = vsub.f32 %v2088_v0, %v2102_v15  ;;  %511 = vperm.xlu0 %1535, %v2102_v15   ;;  %v2107_v36 = vsel %vm374_vm4, 0.0, %v358_v12 }
 0x158   :  { %516 = vperm.xlu1 %1536, %v2107_v36   ;;  %v406_v25 = vsub.f32 %v2091_v31, %v2107_v36  ;;  %1555 = vpow2.f32 %v413_v10 }
 0x159   :  { %1557 = vpow2.f32 %v423_v24 }
 0x15a   :  { %1559 = vpow2.f32 %v417_v26 }
 0x15b   :  { %687 = vperm.xlu0 %1535, %v2114_v30   ;;  %1561 = vpow2.f32 %v427_v37 }
 0x15c   :  { %682 = vperm.xlu1 %1536, %v2116_v32   ;;  %1563 = vpow2.f32 %v421_v1 }
 0x15d   :  { %1565 = vpow2.f32 %v431_v45 }
 0x15e   :  { %1567 = vpow2.f32 %v425_v17 }
 0x15f   :  { %702 = vperm.xlu0 %1535, %v2124_v40   ;;  %1569 = vpow2.f32 %v429_v39 }
 0x160   :  { %692 = vperm.xlu1 %1536, %v2126_v43   ;;  %1571 = vpow2.f32 %v433_v52 }
 0x161   :  { %v2130_v46 = vpop.eup %1553 }
 0x162   :  { %v2134_v34 = vpop.eup %1555 }
 0x163   :  { %712 = vperm.xlu0 %1535, %v2130_v46   ;;  %v2140_v50 = vpop.eup %1557 }
 0x164   :  { %697 = vperm.xlu1 %1536, %v2134_v34   ;;  %v2142_v54 = vpop.eup %1559 }
 0x165   :  { %v2146_v2 = vpop.eup %1561 }
 0x166   :  { %v2148_v57 = vpop.eup %1563 }
 0x167   :  { %722 = vperm.xlu0 %1535, %v2140_v50   ;;  %v2152_v18 = vpop.eup %1565 }
 0x168   :  { %707 = vperm.xlu1 %1536, %v2142_v54   ;;  %v2154_v35 = vpop.eup %1567 }
 0x169   :  { %v2158_v58 = vpop.eup %1569 }
 0x16a   :  { %v2161_v22 = vpop.eup %1571 }
 0x16b   :  { %732 = vperm.xlu0 %1535, %v2146_v2  }
 0x16c   :  { %717 = vperm.xlu1 %1536, %v2148_v57  }
 0x16f   :  { %742 = vperm.xlu0 %1535, %v2152_v18  }
 0x170   :  { %727 = vperm.xlu1 %1536, %v2154_v35  }
 0x174   :  { %737 = vperm.xlu1 %1536, %v2158_v58  }
 0x178   :  { %747 = vperm.xlu1 %1536, %v2161_v22  }
 0x1a2   :  { %v447_v29 = vpop.permute.xlu0 %446 }
 0x1a3   :  { %v442_v62 = vpop.permute.xlu1 %441  ;;  %v520_v23 = vsub.f32 %v1887_v44, %v447_v29 }
 0x1a4   :  { %v519_v41 = vsub.f32 %v1891_v47, %v442_v62 }
 0x1a5   :  { %v537_v55 = vmul.f32 1.442695, %v520_v23 }
 0x1a6   :  { %v535_v3 = vmul.f32 1.442695, %v519_v41 }
 0x1a7   :  { %1573 = vpow2.f32 %v537_v55  ;;  %v482_v5 = vpop.permute.xlu1 %481 }
 0x1a8   :  { %1575 = vpow2.f32 %v535_v3  ;;  %v527_v42 = vsub.f32 %v1898_v48, %v482_v5 }
 0x1aa   :  { %v551_v61 = vmul.f32 1.442695, %v527_v42 }
 0x1ab   :  { %v487_v6 = vpop.permute.xlu1 %486 }
 0x1ac   :  { %v528_v10 = vsub.f32 %v1903_v53, %v487_v6  ;;  %1577 = vpow2.f32 %v551_v61 }
 0x1ae   :  { %v553_v12 = vmul.f32 1.442695, %v528_v10 }
 0x1b0   :  { %1579 = vpow2.f32 %v553_v12 }
 0x1b1   :  { %v1574_v13 = vpop.eup %1573 }
 0x1b2   :  { %v1576_v14 = vpop.eup %1575  ;;  %601 = vadd.xlane.f32.xlu1 %v1574_v13  ;;  %v452_v44 = vpop.permute.xlu0 %451 }
 0x1b3   :  { %599 = vadd.xlane.f32.xlu0 %v1576_v14  ;;  %v457_v47 = vpop.permute.xlu1 %456  ;;  %v521_v24 = vsub.f32 %v1911_v56, %v452_v44  ;;  %v776_v9 = vpack.c.bf16 %v1574_v13, %v1576_v14 }
 0x1b4   :  { %v522_v26 = vsub.f32 %v1915_v59, %v457_v47 }
 0x1b5   :  { %v539_v27 = vmul.f32 1.442695, %v521_v24  ;;  %1448 = vmatprep.mubr.bf16.mxu0 %v776_v9 }
 0x1b6   :  { %v541_v48 = vmul.f32 1.442695, %v522_v26  ;;  %v492_v37 = vpop.permute.xlu0 %491  ;;  %v2172_v1 = vpop.eup %1577 }
 0x1b7   :  { %1581 = vpow2.f32 %v539_v27  ;;  %v497_v53 = vpop.permute.xlu1 %496  ;;  %v529_v38 = vsub.f32 %v1923_v60, %v492_v37 }
 0x1b8   :  { %1583 = vpow2.f32 %v541_v48  ;;  %v530_v51 = vsub.f32 %v1927_v63, %v497_v53 }
 0x1b9   :  { %v555_v45 = vmul.f32 1.442695, %v529_v38 }
 0x1ba   :  { %v2174_v17 = vpop.eup %1579  ;;  %v557_v56 = vmul.f32 1.442695, %v530_v51 }
 0x1bb   :  { %1585 = vpow2.f32 %v555_v45  ;;  %v780_v59 = vpack.c.bf16 %v2174_v17, %v2172_v1 }
 0x1bc   :  { %1587 = vpow2.f32 %v557_v56 }
 0x1bd   :  { %1456 = vmatprep.mubr.bf16.mxu1 %v780_v59 }
 0x1c1   :  { %v1582_v33 = vpop.eup %1581 }
 0x1c2   :  { %v1584_v39 = vpop.eup %1583  ;;  %603 = vadd.xlane.f32.xlu0 %v1582_v33  ;;  %v462_v49 = vpop.permute.xlu0 %461 }
 0x1c3   :  { %v467_v60 = vpop.permute.xlu1 %466  ;;  %v523_v52 = vsub.f32 %v1935_v4, %v462_v49  ;;  %v777_v63 = vpack.c.bf16 %v1584_v39, %v1582_v33 }
 0x1c4   :  { %v524_v29 = vsub.f32 %v1939_v7, %v467_v60 }
 0x1c5   :  { %v1586_v62 = vpop.eup %1585  ;;  %v543_v23 = vmul.f32 1.442695, %v523_v52  ;;  %1449 = vmatmul.mubr.bf16.vlgmr.msra.gmra.mrb[0].mxu0 %v777_v63 }
 0x1c6   :  { %v1588_v41 = vpop.eup %1587  ;;  %v545_v55 = vmul.f32 1.442695, %v524_v29  ;;  %605 = vadd.xlane.f32.xlu0 %v1584_v39  ;;  %v502_v3 = vpop.permute.xlu0 %501  ;;  %v435_v39 = vmul.f32 1.442695, %v405_v28 }
 0x1c7   :  { %1589 = vpow2.f32 %v543_v23  ;;  %v507_v5 = vpop.permute.xlu1 %506  ;;  %v531_v42 = vsub.f32 %v1947_v8, %v502_v3  ;;  %v781_v61 = vpack.c.bf16 %v1588_v41, %v1586_v62  ;;  %v567_v3 = vld [vmem:[#allocation3] sm:$0xff] }
 0x1c8   :  { %1591 = vpow2.f32 %v545_v55  ;;  %v532_v6 = vsub.f32 %v1951_v11, %v507_v5 }
 0x1c9   :  { %v559_v10 = vmul.f32 1.442695, %v531_v42  ;;  %1457 = vmatmul.mubr.bf16.vlgmr.msra.gmra.mrb[0].mxu1 %v781_v61  ;;  %v583_v61 = vmul.f32 %v2116_v32, %v567_v3  ;;  %v571_v32 = vld [vmem:[#allocation3 + $0x20] sm:$0xff] }
 0x1ca   :  { %v561_v4 = vmul.f32 1.442695, %v532_v6 }
 0x1cb   :  { %1593 = vpow2.f32 %v559_v10 }
 0x1cc   :  { %1595 = vpow2.f32 %v561_v4 }
 0x1d1   :  { %v1590_v7 = vpop.eup %1589 }
 0x1d2   :  { %v1592_v12 = vpop.eup %1591  ;;  %607 = vadd.xlane.f32.xlu1 %v1590_v7  ;;  %v472_v13 = vpop.permute.xlu0 %471 }
 0x1d3   :  { %v477_v14 = vpop.permute.xlu1 %476  ;;  %609 = vadd.xlane.f32.xlu0 %v1592_v12  ;;  %v525_v44 = vsub.f32 %v1959_v16, %v472_v13  ;;  %v778_v47 = vpack.c.bf16 %v1592_v12, %v1590_v7  ;;  %v569_v7 = vld [vmem:[#allocation3 + $0x10] sm:$0xff] }
 0x1d4   :  { %v526_v8 = vsub.f32 %v1963_v19, %v477_v14  ;;  %v585_v12 = vmul.f32 %v2126_v43, %v569_v7  ;;  %v570_v14 = vld [vmem:[#allocation3 + $0x18] sm:$0xff] }
 0x1d5   :  { %v1594_v24 = vpop.eup %1593  ;;  %v547_v9 = vmul.f32 1.442695, %v525_v44  ;;  %1452 = vmatprep.mubr.bf16.mxu0 %v778_v47 }
 0x1d6   :  { %v1596_v11 = vpop.eup %1595  ;;  %v549_v26 = vmul.f32 1.442695, %v526_v8  ;;  %v512_v27 = vpop.permute.xlu0 %511 }
 0x1d7   :  { %1597 = vpow2.f32 %v547_v9  ;;  %v517_v48 = vpop.permute.xlu1 %516  ;;  %v533_v37 = vsub.f32 %v1971_v20, %v512_v27  ;;  %v782_v53 = vpack.c.bf16 %v1596_v11, %v1594_v24  ;;  %v587_v9 = vmul.f32 %v2124_v40, %v571_v32 }
 0x1d8   :  { %1599 = vpow2.f32 %v549_v26  ;;  %v534_v38 = vsub.f32 %v1975_v21, %v517_v48  ;;  %v437_v21 = vmul.f32 1.442695, %v406_v25 }
 0x1d9   :  { %v563_v51 = vmul.f32 1.442695, %v533_v37  ;;  %1460 = vmatprep.mubr.bf16.mxu1 %v782_v53  ;;  %v573_v37 = vld [vmem:[#allocation3 + $0x30] sm:$0xff] }
 0x1da   :  { %v565_v16 = vmul.f32 1.442695, %v534_v38  ;;  %v2206_v36 = vpop.permute.xlu0 %687  ;;  %v589_v53 = vmul.f32 %v2130_v46, %v573_v37 }
 0x1db   :  { %1601 = vpow2.f32 %v563_v51  ;;  %v2200_v49 = vpop.permute.xlu1 %682 }
 0x1dc   :  { %1603 = vpow2.f32 %v565_v16  ;;  %v575_v16 = vld [vmem:[#allocation3 + $0x40] sm:$0xff] }
 0x1dd   :  { %1605 = vpow2.f32 %v437_v21 }
 0x1de   :  { %1607 = vpow2.f32 %v435_v39  ;;  %v2210_v0 = vpop.permute.xlu0 %702  ;;  %v578_v39 = vld [vmem:[#allocation3 + $0x58] sm:$0xff] }
 0x1df   :  { %v2202_v60 = vpop.permute.xlu1 %692 }
 0x1e1   :  { %v1598_v19 = vpop.eup %1597 }
 0x1e2   :  { %v1600_v45 = vpop.eup %1599  ;;  %611 = vadd.xlane.f32.xlu1 %v1598_v19  ;;  %v2214_v28 = vpop.permute.xlu0 %712 }
 0x1e3   :  { %613 = vadd.xlane.f32.xlu0 %v1600_v45  ;;  %v779_v56 = vpack.c.bf16 %v1600_v45, %v1598_v19  ;;  %v2204_v31 = vpop.permute.xlu1 %697  ;;  %v576_v45 = vld [vmem:[#allocation3 + $0x48] sm:$0xff] }
 0x1e5   :  { %v1602_v59 = vpop.eup %1601  ;;  %1453 = vmatmul.mubr.bf16.gmra.mrb[4].mxu0 %v779_v56 }
 0x1e6   :  { %v1604_v33 = vpop.eup %1603  ;;  %615 = vadd.xlane.f32.xlu1 %v2172_v1  ;;  %v2218_v63 = vpop.permute.xlu0 %722 }
 0x1e7   :  { %617 = vadd.xlane.f32.xlu0 %v2174_v17  ;;  %v783_v20 = vpack.c.bf16 %v1604_v33, %v1602_v59  ;;  %v2194_v1 = vpop.eup %1605  ;;  %v2208_v25 = vpop.permute.xlu1 %707 }
 0x1e8   :  { %v2197_v17 = vpop.eup %1607 }
 0x1e9   :  { %1461 = vmatmul.mubr.bf16.gmra.mrb[4].mxu1 %v783_v20  ;;  %v577_v20 = vld [vmem:[#allocation3 + $0x50] sm:$0xff] }
 0x1ea   :  { %619 = vadd.xlane.f32.xlu1 %v1586_v62  ;;  %v2222_v62 = vpop.permute.xlu0 %732 }
 0x1eb   :  { %621 = vadd.xlane.f32.xlu0 %v1588_v41  ;;  %v2212_v15 = vpop.permute.xlu1 %717  ;;  %v568_v41 = vld [vmem:[#allocation3 + $0x8] sm:$0xff] }
 0x1ec   :  { %v584_v5 = vmul.f32 %v2114_v30, %v568_v41  ;;  %v586_v30 = vmul.f32 %v2134_v34, %v570_v14  ;;  %v574_v34 = vld [vmem:[#allocation3 + $0x38] sm:$0xff] }
 0x1ed   :  { %v590_v51 = vmul.f32 %v2148_v57, %v574_v34  ;;  %v593_v57 = vmul.f32 %v2146_v2, %v577_v20  ;;  %v581_v2 = vld [vmem:[#allocation3 + $0x70] sm:$0xff]  ;;  %v582_v14 = vld [vmem:[#allocation3 + $0x78] sm:$0xff] }
 0x1ee   :  { %623 = vadd.xlane.f32.xlu1 %v1594_v24  ;;  %v2226_v55 = vpop.permute.xlu0 %742  ;;  %v572_v24 = vld [vmem:[#allocation3 + $0x28] sm:$0xff] }
 0x1ef   :  { %625 = vadd.xlane.f32.xlu0 %v1596_v11  ;;  %v2216_v52 = vpop.permute.xlu1 %727  ;;  %v588_v26 = vmul.f32 %v2142_v54, %v572_v24  ;;  %v591_v54 = vmul.f32 %v2140_v50, %v575_v16  ;;  %v579_v50 = vld [vmem:[#allocation3 + $0x60] sm:$0xff] }
 0x1f0   :  { %v664_v24 = vld [vmem:[#allocation4] sm:$0xff] }
 0x1f2   :  { %627 = vadd.xlane.f32.xlu1 %v1602_v59 }
 0x1f3   :  { %629 = vadd.xlane.f32.xlu0 %v1604_v33  ;;  %v2220_v29 = vpop.permute.xlu1 %737  ;;  %v592_v33 = vmul.f32 %v2154_v35, %v576_v45  ;;  %v595_v35 = vmul.f32 %v2152_v18, %v579_v50  ;;  %v678_v50 = vld [vmem:[#allocation4 + $0x70] sm:$0xff] }
 0x1f7   :  { %v2224_v23 = vpop.permute.xlu1 %747 }
 0x203   :  { %757 = vperm.xlu1 %1536, %v2194_v1  }
 0x209   :  { %752 = vperm.xlu0 %1535, %v2197_v17  }
 0x23f   :  { %v602_v42 = vpop.xlane.xlu1 %601 }
 0x240   :  { %v632_v6 = vadd.f32 %v602_v42, %v584_v5  ;;  %v600_v10 = vpop.xlane.xlu0 %599  ;;  %v594_v5 = vmul.f32 %v2158_v58, %v578_v39  ;;  %v597_v58 = vmul.f32 %v2197_v17, %v581_v2  ;;  %v760_v17 = vmul.f32 %v2200_v49, %v664_v24 }
 0x241   :  { %v631_v4 = vadd.f32 %v600_v10, %v583_v61 }
 0x242   :  { %649 = vst.msk [vmem:[#allocation3 + $0x8] sm:$0xff] %vm33_vm0, %v632_v6  ;;  %v580_v6 = vld [vmem:[#allocation3 + $0x68] sm:$0xff] }
 0x243   :  { %648 = vst.msk [vmem:[#allocation3] sm:$0xff] %vm33_vm0, %v631_v4  ;;  %v596_v7 = vmul.f32 %v2161_v22, %v580_v6  ;;  %v666_v22 = vld [vmem:[#allocation4 + $0x10] sm:$0xff]  ;;  %v676_v6 = vld [vmem:[#allocation4 + $0x60] sm:$0xff] }
 0x24f   :  { %v604_v13 = vpop.xlane.xlu0 %603 }
 0x250   :  { %v633_v44 = vadd.f32 %v604_v13, %v585_v12 }
 0x252   :  { %650 = vst.msk [vmem:[#allocation3 + $0x10] sm:$0xff] %vm33_vm0, %v633_v44 }
 0x253   :  { %v606_v47 = vpop.xlane.xlu0 %605 }
 0x254   :  { %v634_v8 = vadd.f32 %v606_v47, %v586_v30  ;;  %v598_v47 = vmul.f32 %v2194_v1, %v582_v14  ;;  %v672_v1 = vld [vmem:[#allocation4 + $0x40] sm:$0xff]  ;;  %v677_v14 = vld [vmem:[#allocation4 + $0x68] sm:$0xff] }
 0x255   :  { %v768_v49 = vmul.f32 %v2218_v63, %v672_v1  ;;  %v670_v63 = vld [vmem:[#allocation4 + $0x30] sm:$0xff] }
 0x256   :  { %651 = vst.msk [vmem:[#allocation3 + $0x18] sm:$0xff] %vm33_vm0, %v634_v8 }
 0x25f   :  { %v608_v11 = vpop.xlane.xlu1 %607 }
 0x260   :  { %v635_v27 = vadd.f32 %v608_v11, %v587_v9  ;;  %v610_v43 = vpop.xlane.xlu0 %609  ;;  %v667_v9 = vld [vmem:[#allocation4 + $0x18] sm:$0xff]  ;;  %v665_v11 = vld [vmem:[#allocation4 + $0x8] sm:$0xff] }
 0x261   :  { %v636_v48 = vadd.f32 %v610_v43, %v588_v26  ;;  %v762_v26 = vmul.f32 %v2202_v60, %v666_v22 }
 0x262   :  { %652 = vst.msk [vmem:[#allocation3 + $0x20] sm:$0xff] %vm33_vm0, %v635_v27  ;;  %v674_v27 = vld [vmem:[#allocation4 + $0x50] sm:$0xff] }
 0x263   :  { %653 = vst.msk [vmem:[#allocation3 + $0x28] sm:$0xff] %vm33_vm0, %v636_v48  ;;  %v763_v48 = vmul.f32 %v2204_v31, %v667_v9 }
 0x26f   :  { %v612_v38 = vpop.xlane.xlu1 %611 }
 0x270   :  { %v637_v19 = vadd.f32 %v612_v38, %v589_v53  ;;  %v614_v40 = vpop.xlane.xlu0 %613  ;;  %v761_v53 = vmul.f32 %v2206_v36, %v665_v11  ;;  %v675_v38 = vld [vmem:[#allocation4 + $0x58] sm:$0xff] }
 0x271   :  { %v638_v56 = vadd.f32 %v614_v40, %v590_v51  ;;  %v673_v40 = vld [vmem:[#allocation4 + $0x48] sm:$0xff]  ;;  %v771_v31 = vmul.f32 %v2220_v29, %v675_v38  ;;  %v766_v29 = vmul.f32 %v2214_v28, %v670_v63 }
 0x272   :  { %654 = vst.msk [vmem:[#allocation3 + $0x30] sm:$0xff] %vm33_vm0, %v637_v19  ;;  %v770_v19 = vmul.f32 %v2222_v62, %v674_v27  ;;  %v769_v36 = vmul.f32 %v2216_v52, %v673_v40 }
 0x273   :  { %655 = vst.msk [vmem:[#allocation3 + $0x38] sm:$0xff] %vm33_vm0, %v638_v56  ;;  %v616_v59 = vpop.xlane.xlu1 %615 }
 0x274   :  { %v639_v21 = vadd.f32 %v616_v59, %v591_v54  ;;  %v618_v46 = vpop.xlane.xlu0 %617 }
 0x275   :  { %v640_v41 = vadd.f32 %v618_v46, %v592_v33 }
 0x276   :  { %656 = vst.msk [vmem:[#allocation3 + $0x40] sm:$0xff] %vm33_vm0, %v639_v21 }
 0x277   :  { %657 = vst.msk [vmem:[#allocation3 + $0x48] sm:$0xff] %vm33_vm0, %v640_v41  ;;  %v620_v3 = vpop.xlane.xlu1 %619  ;;  %v668_v41 = vld [vmem:[#allocation4 + $0x20] sm:$0xff] }
 0x278   :  { %v641_v42 = vadd.f32 %v620_v3, %v593_v57  ;;  %v622_v61 = vpop.xlane.xlu0 %621  ;;  %v671_v57 = vld [vmem:[#allocation4 + $0x38] sm:$0xff]  ;;  %v669_v3 = vld [vmem:[#allocation4 + $0x28] sm:$0xff] }
 0x279   :  { %v642_v10 = vadd.f32 %v622_v61, %v594_v5  ;;  %v764_v5 = vmul.f32 %v2210_v0, %v668_v41  ;;  %v767_v61 = vmul.f32 %v2212_v15, %v671_v57  ;;  %v772_v0 = vmul.f32 %v2226_v55, %v676_v6 }
 0x27a   :  { %658 = vst.msk [vmem:[#allocation3 + $0x50] sm:$0xff] %vm33_vm0, %v641_v42 }
 0x27b   :  { %659 = vst.msk [vmem:[#allocation3 + $0x58] sm:$0xff] %vm33_vm0, %v642_v10  ;;  %v624_v4 = vpop.xlane.xlu1 %623 }
 0x27c   :  { %v643_v12 = vadd.f32 %v624_v4, %v595_v35  ;;  %v626_v13 = vpop.xlane.xlu0 %625  ;;  %v765_v4 = vmul.f32 %v2208_v25, %v669_v3  ;;  %v773_v25 = vmul.f32 %v2224_v23, %v677_v14 }
 0x27d   :  { %v644_v44 = vadd.f32 %v626_v13, %v596_v7  ;;  %v679_v7 = vld [vmem:[#allocation4 + $0x78] sm:$0xff] }
 0x27e   :  { %660 = vst.msk [vmem:[#allocation3 + $0x60] sm:$0xff] %vm33_vm0, %v643_v12 }
 0x27f   :  { %661 = vst.msk [vmem:[#allocation3 + $0x68] sm:$0xff] %vm33_vm0, %v644_v44  ;;  %v628_v30 = vpop.xlane.xlu1 %627 }
 0x280   :  { %v645_v18 = vadd.f32 %v628_v30, %v597_v58  ;;  %v630_v8 = vpop.xlane.xlu0 %629 }
 0x281   :  { %v646_v32 = vadd.f32 %v630_v8, %v598_v47 }
 0x282   :  { %662 = vst.msk [vmem:[#allocation3 + $0x70] sm:$0xff] %vm33_vm0, %v645_v18 }
 0x283   :  { %663 = vst.msk [vmem:[#allocation3 + $0x78] sm:$0xff] %vm33_vm0, %v646_v32  ;;  %v758_v2 = vpop.permute.xlu1 %757 }
 0x284   :  { %v775_v15 = vmul.f32 %v758_v2, %v679_v7 }
 0x288   :  { %v753_v52 = vpop.permute.xlu0 %752 }
 0x289   :  { %v774_v44 = vmul.f32 %v753_v52, %v678_v50 }
 0x298   :  { %v1450_v43 = vpop.f32.mrb[0].mxu0 }
 0x299   :  { %v947_v37 = vadd.f32 %v1450_v43, %v762_v26  ;;  %v882_v34 = vpop.f32.mrb[1].mxu0 }
 0x29a   :  { %v945_v51 = vadd.f32 %v882_v34, %v760_v17  ;;  %v1451_v16 = vpop.f32.mrb[2].mxu0 }
 0x29b   :  { %963 = vst [vmem:[#allocation4 + $0x10] sm:$0xff] %v947_v37  ;;  %v948_v45 = vadd.f32 %v1451_v16, %v763_v48  ;;  %v885_v60 = vpop.f32.mrb[3].mxu0 }
 0x29c   :  { %961 = vst [vmem:[#allocation4] sm:$0xff] %v945_v51  ;;  %v946_v56 = vadd.f32 %v885_v60, %v761_v53  ;;  %v1458_v54 = vpop.f32.mrb[0].mxu1 }
 0x29d   :  { %964 = vst [vmem:[#allocation4 + $0x18] sm:$0xff] %v948_v45  ;;  %v955_v59 = vadd.f32 %v1458_v54, %v770_v19  ;;  %v914_v33 = vpop.f32.mrb[1].mxu1 }
 0x29e   :  { %962 = vst [vmem:[#allocation4 + $0x8] sm:$0xff] %v946_v56  ;;  %v953_v20 = vadd.f32 %v914_v33, %v768_v49  ;;  %v1459_v21 = vpop.f32.mrb[2].mxu1 }
 0x29f   :  { %971 = vst [vmem:[#allocation4 + $0x50] sm:$0xff] %v955_v59  ;;  %v956_v62 = vadd.f32 %v1459_v21, %v771_v31  ;;  %v917_v46 = vpop.f32.mrb[3].mxu1 }
 0x2a0   :  { %969 = vst [vmem:[#allocation4 + $0x40] sm:$0xff] %v953_v20  ;;  %v954_v39 = vadd.f32 %v917_v46, %v769_v36 }
 0x2a1   :  { %972 = vst [vmem:[#allocation4 + $0x58] sm:$0xff] %v956_v62 }
 0x2a2   :  { %970 = vst [vmem:[#allocation4 + $0x48] sm:$0xff] %v954_v39 }
 0x2b8   :  { %v1454_v42 = vpop.f32.mrb[4].mxu0 }
 0x2b9   :  { %v951_v10 = vadd.f32 %v1454_v42, %v766_v29  ;;  %v898_v35 = vpop.f32.mrb[5].mxu0 }
 0x2ba   :  { %v949_v12 = vadd.f32 %v898_v35, %v764_v5  ;;  %v1455_v13 = vpop.f32.mrb[6].mxu0 }
 0x2bb   :  { %967 = vst [vmem:[#allocation4 + $0x30] sm:$0xff] %v951_v10  ;;  %v952_v28 = vadd.f32 %v1455_v13, %v767_v61  ;;  %v901_v58 = vpop.f32.mrb[7].mxu0 }
 0x2bc   :  { %965 = vst [vmem:[#allocation4 + $0x20] sm:$0xff] %v949_v12  ;;  %v950_v30 = vadd.f32 %v901_v58, %v765_v4  ;;  %v1462_v47 = vpop.f32.mrb[4].mxu1 }
 0x2bd   :  { %968 = vst [vmem:[#allocation4 + $0x38] sm:$0xff] %v952_v28  ;;  %v959_v18 = vadd.f32 %v1462_v47, %v774_v44  ;;  %v930_v8 = vpop.f32.mrb[5].mxu1 }
 0x2be   :  { %966 = vst [vmem:[#allocation4 + $0x28] sm:$0xff] %v950_v30  ;;  %v957_v32 = vadd.f32 %v930_v8, %v772_v0  ;;  %v1463_v22 = vpop.f32.mrb[6].mxu1 }
 0x2bf   :  { %975 = vst [vmem:[#allocation4 + $0x70] sm:$0xff] %v959_v18  ;;  %v960_v24 = vadd.f32 %v1463_v22, %v775_v15  ;;  %v933_v9 = vpop.f32.mrb[7].mxu1 }
 0x2c0   :  { %973 = vst [vmem:[#allocation4 + $0x60] sm:$0xff] %v957_v32  ;;  %v958_v11 = vadd.f32 %v933_v9, %v773_v25 }
 0x2c1   :  { %976 = vst [vmem:[#allocation4 + $0x78] sm:$0xff] %v960_v24 }
 0x2c2   :  { %974 = vst [vmem:[#allocation4 + $0x68] sm:$0xff] %v958_v11 }
 0x2c3 PF:  { %v1004_v55 = vld [vmem:[#allocation3 + $0x40] sm:$0xff]  ;;  %v1005_v17 = vld [vmem:[#allocation3 + $0x48] sm:$0xff]  ;;  %v1678_v27 = vmov 0   ;;  %v999_v43 = vld [vmem:[#allocation3 + $0x18] sm:$0xff] }
 0x2c4   :  { %v996_v26 = vld [vmem:[#allocation3] sm:$0xff]  ;;  %1610 = vset.pattern.permute.xlu1 %v1678_v27  ;;  %1609 = vset.pattern.permute.xlu0 %v1678_v27  ;;  %vm1020_vm0 = vcmp.gt.f32.partialorder %v1004_v55, 0.0  ;;  %vm1021_vm6 = vcmp.gt.f32.partialorder %v1005_v17, 0.0  ;;  %v997_v23 = vld [vmem:[#allocation3 + $0x8] sm:$0xff]  ;;  %v998_v48 = vld [vmem:[#allocation3 + $0x10] sm:$0xff]  ;;  %vm1015_vm8 = vcmp.gt.f32.partialorder %v999_v43, 0.0 }
 0x2c5   :  { %vm1012_vm5 = vcmp.gt.f32.partialorder %v996_v26, 0.0  ;;  %v1036_v1 = vsel %vm1020_vm0, %v1004_v55, 1.0  ;;  %v1037_v34 = vsel %vm1021_vm6, %v1005_v17, 1.0  ;;  %vm1013_vm7 = vcmp.gt.f32.partialorder %v997_v23, 0.0  ;;  %v1007_v38 = vld [vmem:[#allocation3 + $0x58] sm:$0xff]  ;;  %v1006_v51 = vld [vmem:[#allocation3 + $0x50] sm:$0xff] }
 0x2c6   :  { %v1028_v37 = vsel %vm1012_vm5, %v996_v26, 1.0  ;;  %1619 = vrcp.f32 %v1036_v1  ;;  %v1029_v53 = vsel %vm1013_vm7, %v997_v23, 1.0  ;;  %vm1014_vm9 = vcmp.gt.f32.partialorder %v998_v48, 0.0  ;;  %v1611_v16 = vld [vmem:[%s2319_s6] sm:$0xff]   ;;  %v1612_v40 = vld [vmem:[%s2319_s6 + $0x8] sm:$0xff]   ;;  %v1613_v33 = vld [vmem:[%s2319_s6 + $0x10] sm:$0xff]  }
 0x2c7   :  { %1621 = vrcp.f32 %v1028_v37  ;;  %v1031_v19 = vsel %vm1015_vm8, %v999_v43, 1.0  ;;  %v1030_v45 = vsel %vm1014_vm9, %v998_v48, 1.0  ;;  %vm1023_vm10 = vcmp.gt.f32.partialorder %v1007_v38, 0.0  ;;  %v1001_v60 = vld [vmem:[#allocation3 + $0x28] sm:$0xff]  ;;  %1464 = vmatprep.subr.bf16.mxu0 %v1611_v16  ;;  %1512 = vmatprep.subr.bf16.mxu1 %v1611_v16  ;;  %v1000_v49 = vld [vmem:[#allocation3 + $0x20] sm:$0xff]  ;;  %v1003_v63 = vld [vmem:[#allocation3 + $0x38] sm:$0xff] }
 0x2c8   :  { %1623 = vrcp.f32 %v1037_v34  ;;  %vm1022_vm11 = vcmp.gt.f32.partialorder %v1006_v51, 0.0  ;;  %1465 = vmatpush3.bf16.xpose.msra.mxu0 %v1611_v16  ;;  %1520 = vmatpush3.bf16.xpose.msra.mxu1 %v1611_v16  ;;  %v1039_v56 = vsel %vm1023_vm10, %v1007_v38, 1.0  ;;  %vm1017_vm12 = vcmp.gt.f32.partialorder %v1001_v60, 0.0  ;;  %v1009_v31 = vld [vmem:[#allocation3 + $0x68] sm:$0xff]  ;;  %v1008_v59 = vld [vmem:[#allocation3 + $0x60] sm:$0xff]  ;;  %v1002_v41 = vld [vmem:[#allocation3 + $0x30] sm:$0xff] }
 0x2c9   :  { %1625 = vrcp.f32 %v1029_v53  ;;  %1466 = vmatprep.subr.bf16.mxu0 %v1612_v40  ;;  %1513 = vmatprep.subr.bf16.mxu1 %v1612_v40  ;;  %v1038_v54 = vsel %vm1022_vm11, %v1006_v51, 1.0  ;;  %vm1016_vm13 = vcmp.gt.f32.partialorder %v1000_v49, 0.0  ;;  %v1033_v21 = vsel %vm1017_vm12, %v1001_v60, 1.0  ;;  %v1011_v50 = vld [vmem:[#allocation3 + $0x78] sm:$0xff]  ;;  %v1010_v52 = vld [vmem:[#allocation3 + $0x70] sm:$0xff]  ;;  %v1615_v13 = vld [vmem:[%s2319_s6 + $0x20] sm:$0xff]  }
 0x2ca   :  { %1627 = vrcp.f32 %v1031_v19  ;;  %v1032_v46 = vsel %vm1016_vm13, %v1000_v49, 1.0  ;;  %vm1025_vm14 = vcmp.gt.f32.partialorder %v1009_v31, 0.0  ;;  %vm1024_vm15 = vcmp.gt.f32.partialorder %v1008_v59, 0.0  ;;  %v1614_v42 = vld [vmem:[%s2319_s6 + $0x18] sm:$0xff]   ;;  %v1616_v0 = vld [vmem:[%s2319_s6 + $0x28] sm:$0xff]   ;;  %v1617_v15 = vld [vmem:[%s2319_s6 + $0x30] sm:$0xff]  }
 0x2cb   :  { %1629 = vrcp.f32 %v1030_v45  ;;  %v1041_v57 = vsel %vm1025_vm14, %v1009_v31, 1.0  ;;  %v1040_v3 = vsel %vm1024_vm15, %v1008_v59, 1.0  ;;  %vm1019_vm1 = vcmp.gt.f32.partialorder %v1003_v63, 0.0  ;;  %v1618_v18 = vld [vmem:[%s2319_s6 + $0x38] sm:$0xff]   ;;  %v1068_v32 = vld [vmem:[#allocation4 + $0x40] sm:$0xff]  ;;  %v1069_v22 = vld [vmem:[#allocation4 + $0x48] sm:$0xff] }
 0x2cc   :  { %1631 = vrcp.f32 %v1039_v56  ;;  %vm1018_vm2 = vcmp.gt.f32.partialorder %v1002_v41, 0.0  ;;  %v1035_v61 = vsel %vm1019_vm1, %v1003_v63, 1.0  ;;  %vm1027_vm3 = vcmp.gt.f32.partialorder %v1011_v50, 0.0  ;;  %v1060_v24 = vld [vmem:[#allocation4] sm:$0xff]  ;;  %v1061_v9 = vld [vmem:[#allocation4 + $0x8] sm:$0xff]  ;;  %v1063_v43 = vld [vmem:[#allocation4 + $0x18] sm:$0xff] }
 0x2cd   :  { %1633 = vrcp.f32 %v1038_v54  ;;  %v1034_v10 = vsel %vm1018_vm2, %v1002_v41, 1.0  ;;  %vm1026_vm4 = vcmp.gt.f32.partialorder %v1010_v52, 0.0  ;;  %v1043_v4 = vsel %vm1027_vm3, %v1011_v50, 1.0  ;;  %v1062_v48 = vld [vmem:[#allocation4 + $0x10] sm:$0xff]  ;;  %v1071_v16 = vld [vmem:[#allocation4 + $0x58] sm:$0xff]  ;;  %v1065_v54 = vld [vmem:[#allocation4 + $0x28] sm:$0xff] }
 0x2ce   :  { %1635 = vrcp.f32 %v1033_v21  ;;  %v1042_v2 = vsel %vm1026_vm4, %v1010_v52, 1.0  ;;  %v1070_v19 = vld [vmem:[#allocation4 + $0x50] sm:$0xff]  ;;  %v1064_v31 = vld [vmem:[#allocation4 + $0x20] sm:$0xff] }
 0x2cf   :  { %1637 = vrcp.f32 %v1032_v46  ;;  %v1072_v46 = vld [vmem:[#allocation4 + $0x60] sm:$0xff] }
 0x2d0   :  { %v1620_v36 = vpop.eup %1619  ;;  %1467 = vmatpush3.bf16.xpose.msra.mxu0 %v1612_v40  ;;  %1521 = vmatpush3.bf16.xpose.msra.mxu1 %v1612_v40  ;;  %1639 = vrcp.f32 %v1041_v57 }
 0x2d1   :  { %v1622_v20 = vpop.eup %1621  ;;  %1118 = vperm.xlu1 %1610, %v1620_v36   ;;  %1468 = vmatprep.subr.bf16.mxu0 %v1613_v33  ;;  %1641 = vrcp.f32 %v1040_v3  ;;  %v1067_v3 = vld [vmem:[#allocation4 + $0x38] sm:$0xff] }
 0x2d2   :  { %v1624_v62 = vpop.eup %1623  ;;  %1078 = vperm.xlu0 %1609, %v1622_v20   ;;  %1514 = vmatprep.subr.bf16.mxu1 %v1613_v33  ;;  %1643 = vrcp.f32 %v1035_v61 }
 0x2d3   :  { %v1626_v39 = vpop.eup %1625  ;;  %1645 = vrcp.f32 %v1034_v10  ;;  %v1075_v10 = vld [vmem:[#allocation4 + $0x78] sm:$0xff] }
 0x2d4   :  { %v1628_v29 = vpop.eup %1627  ;;  %1647 = vrcp.f32 %v1043_v4 }
 0x2d5   :  { %1123 = vperm.xlu1 %1610, %v1624_v62   ;;  %v1630_v5 = vpop.eup %1629  ;;  %1649 = vrcp.f32 %v1042_v2  ;;  %v1073_v62 = vld [vmem:[#allocation4 + $0x68] sm:$0xff] }
 0x2d6   :  { %1083 = vperm.xlu0 %1609, %v1626_v39   ;;  %v1632_v6 = vpop.eup %1631 }
 0x2d7   :  { %v1634_v35 = vpop.eup %1633 }
 0x2d8   :  { %1469 = vmatpush3.bf16.xpose.msra.mxu0 %v1613_v33  ;;  %1522 = vmatpush3.bf16.xpose.msra.mxu1 %v1613_v33  ;;  %v1636_v7 = vpop.eup %1635 }
 0x2d9   :  { %1093 = vperm.xlu1 %1610, %v1628_v29   ;;  %1470 = vmatprep.subr.bf16.mxu0 %v1614_v42  ;;  %v1638_v12 = vpop.eup %1637 }
 0x2da   :  { %1088 = vperm.xlu0 %1609, %v1630_v5   ;;  %1515 = vmatprep.subr.bf16.mxu1 %v1614_v42  ;;  %v1640_v14 = vpop.eup %1639  ;;  %v1066_v5 = vld [vmem:[#allocation4 + $0x30] sm:$0xff] }
 0x2db   :  { %v1642_v44 = vpop.eup %1641 }
 0x2dc   :  { %v1644_v28 = vpop.eup %1643 }
 0x2dd   :  { %1133 = vperm.xlu1 %1610, %v1632_v6   ;;  %v1646_v58 = vpop.eup %1645 }
 0x2de   :  { %1128 = vperm.xlu0 %1609, %v1634_v35   ;;  %v1648_v30 = vpop.eup %1647  ;;  %v1074_v35 = vld [vmem:[#allocation4 + $0x70] sm:$0xff] }
 0x2df   :  { %v1650_v47 = vpop.eup %1649 }
 0x2e0   :  { %1471 = vmatpush3.bf16.xpose.msra.mxu0 %v1614_v42  ;;  %1523 = vmatpush3.bf16.xpose.msra.mxu1 %v1614_v42 }
 0x2e1   :  { %1103 = vperm.xlu1 %1610, %v1636_v7   ;;  %1472 = vmatprep.subr.bf16.mxu0 %v1615_v13 }
 0x2e2   :  { %1098 = vperm.xlu0 %1609, %v1638_v12   ;;  %1516 = vmatprep.subr.bf16.mxu1 %v1615_v13 }
 0x2e5   :  { %1143 = vperm.xlu1 %1610, %v1640_v14  }
 0x2e6   :  { %1138 = vperm.xlu0 %1609, %v1642_v44   ;;  %v1391_v44 = vld [vmem:[%s2320_s7] ss:$0 sm:$0xff]  ;;  %s1679_s7 = smov [#allocation8]  }
 0x2e7   :  { %s1369_s10 = sshll.u32 %s1679_s7, 4  ;;  %s1370_s10 = int_to_ptr.vmem [resolvable:$true] %s1369_s10 }
 0x2e8   :  { %1473 = vmatpush3.bf16.xpose.msra.mxu0 %v1615_v13  ;;  %1524 = vmatpush3.bf16.xpose.msra.mxu1 %v1615_v13  ;;  %s1651_s11 = scalar_lea.vmem %s1370_s10, 2048  ;;  %p1656_p4 = scmp.lt.s32.totalorder %s1370_s10, %s1370_s10 }
 0x2e9   :  { %1113 = vperm.xlu1 %1610, %v1644_v28   ;;  %1474 = vmatprep.subr.bf16.mxu0 %v1616_v0  ;;  %p1652_p3 = scmp.ne.s32.totalorder %s1370_s10, %s1651_s11  ;;  %p1657_p5 = scmp.lt.s32.totalorder %s1651_s11, %s1651_s11 }
 0x2ea   :  { %1108 = vperm.xlu0 %1609, %v1646_v58   ;;  %1517 = vmatprep.subr.bf16.mxu1 %v1616_v0 }
 0x2eb   :  { %p1658_p6 = por %p1657_p5, %p1656_p4 }
 0x2ed   :  { %1153 = vperm.xlu1 %1610, %v1648_v30   ;;  %p1659_p7 = pnand %p1658_p6, %p1652_p3 }
 0x2ee   :  { %1148 = vperm.xlu0 %1609, %v1650_v47  }
 0x2f0   :  { %1475 = vmatpush3.bf16.xpose.msra.mxu0 %v1616_v0  ;;  %1525 = vmatpush3.bf16.xpose.msra.mxu1 %v1616_v0 }
 0x2f1   :  { %1476 = vmatprep.subr.bf16.mxu0 %v1617_v15  ;;  %1518 = vmatprep.subr.bf16.mxu1 %v1617_v15 }
 0x2f8   :  { %1477 = vmatpush3.bf16.xpose.msra.mxu0 %v1617_v15  ;;  %1526 = vmatpush3.bf16.xpose.msra.mxu1 %v1617_v15 }
 0x2f9   :  { %1478 = vmatprep.subr.bf16.mxu0 %v1618_v18  ;;  %1519 = vmatprep.subr.bf16.mxu1 %v1618_v18 }
 0x300   :  { %1479 = vmatpush3.bf16.xpose.msra.mxu0 %v1618_v18  ;;  %1527 = vmatpush3.bf16.xpose.msra.mxu1 %v1618_v18 }
 0x350   :  { %v1119_v8 = vpop.permute.xlu1 %1118 }
 0x351   :  { %v1079_v25 = vpop.permute.xlu0 %1078  ;;  %v1164_v55 = vmul.f32 %v1119_v8, %v1068_v32 }
 0x352   :  { %v1156_v27 = vmul.f32 %v1079_v25, %v1060_v24 }
 0x354   :  { %v1124_v11 = vpop.permute.xlu1 %1123 }
 0x355   :  { %v1165_v26 = vmul.f32 %v1124_v11, %v1069_v22  ;;  %v1084_v17 = vpop.permute.xlu0 %1083 }
 0x356   :  { %v1157_v23 = vmul.f32 %v1084_v17, %v1061_v9 }
 0x357   :  { %v1176_v1 = vpack.c.bf16 %v1165_v26, %v1164_v55 }
 0x358   :  { %v1094_v37 = vpop.permute.xlu1 %1093  ;;  %v1172_v34 = vpack.c.bf16 %v1157_v23, %v1156_v27 }
 0x359   :  { %v1159_v53 = vmul.f32 %v1094_v37, %v1063_v43  ;;  %v1089_v38 = vpop.permute.xlu0 %1088  ;;  %1488 = vmatprep.mubr.bf16.mxu1 %v1176_v1 }
 0x35a   :  { %v1158_v51 = vmul.f32 %v1089_v38, %v1062_v48  ;;  %1480 = vmatprep.mubr.bf16.mxu0 %v1172_v34 }
 0x35c   :  { %v1173_v40 = vpack.c.bf16 %v1159_v53, %v1158_v51  ;;  %v1134_v45 = vpop.permute.xlu1 %1133 }
 0x35d   :  { %v1167_v60 = vmul.f32 %v1134_v45, %v1071_v16  ;;  %v1129_v49 = vpop.permute.xlu0 %1128 }
 0x35e   :  { %v1166_v56 = vmul.f32 %v1129_v49, %v1070_v19  ;;  %1481 = vmatmul.mubr.bf16.vlgmr.msra.gmra.mrb[0].mxu0 %v1173_v40 }
 0x360   :  { %v1177_v59 = vpack.c.bf16 %v1167_v60, %v1166_v56  ;;  %v1104_v33 = vpop.permute.xlu1 %1103 }
 0x361   :  { %v1161_v36 = vmul.f32 %v1104_v33, %v1065_v54  ;;  %v1099_v20 = vpop.permute.xlu0 %1098 }
 0x362   :  { %v1160_v21 = vmul.f32 %v1099_v20, %v1064_v31  ;;  %1489 = vmatmul.mubr.bf16.vlgmr.msra.gmra.mrb[0].mxu1 %v1177_v59 }
 0x364   :  { %v1174_v39 = vpack.c.bf16 %v1161_v36, %v1160_v21  ;;  %v1144_v63 = vpop.permute.xlu1 %1143 }
 0x365   :  { %v1169_v41 = vmul.f32 %v1144_v63, %v1073_v62  ;;  %v1139_v57 = vpop.permute.xlu0 %1138 }
 0x366   :  { %v1168_v29 = vmul.f32 %v1139_v57, %v1072_v46  ;;  %1484 = vmatprep.mubr.bf16.mxu0 %v1174_v39 }
 0x368   :  { %v1178_v50 = vpack.c.bf16 %v1169_v41, %v1168_v29  ;;  %v1114_v52 = vpop.permute.xlu1 %1113 }
 0x369   :  { %v1163_v42 = vmul.f32 %v1114_v52, %v1067_v3  ;;  %v1109_v61 = vpop.permute.xlu0 %1108 }
 0x36a   :  { %v1162_v6 = vmul.f32 %v1109_v61, %v1066_v5  ;;  %1492 = vmatprep.mubr.bf16.mxu1 %v1178_v50 }
 0x36c   :  { %v1175_v4 = vpack.c.bf16 %v1163_v42, %v1162_v6  ;;  %v1154_v7 = vpop.permute.xlu1 %1153 }
 0x36d   :  { %v1171_v2 = vmul.f32 %v1154_v7, %v1075_v10  ;;  %v1149_v12 = vpop.permute.xlu0 %1148 }
 0x36e   :  { %v1170_v13 = vmul.f32 %v1149_v12, %v1074_v35  ;;  %1485 = vmatmul.mubr.bf16.gmra.mrb[4].mxu0 %v1175_v4 }
 0x370   :  { %v1179_v14 = vpack.c.bf16 %v1171_v2, %v1170_v13 }
 0x372   :  { %1493 = vmatmul.mubr.bf16.gmra.mrb[4].mxu1 %v1179_v14 }
 0x431   :  { %v1482_v28 = vpop.f32.mrb[0].mxu0 }
 0x432   :  { %v1294_v58 = vadd.f32 %v1482_v28, %v1391_v44  ;;  %v1285_v0 = vpop.f32.mrb[1].mxu0 }
 0x433   :  { %v1286_v30 = vadd.f32 %v1391_v44, %v1285_v0  ;;  %v1483_v47 = vpop.f32.mrb[2].mxu0 }
 0x434   :  { %1350 = vst [vmem:[#allocation8 + $0x10] sm:$0xff] %v1294_v58  ;;  %v1297_v15 = vadd.f32 %v1483_v47, %v1391_v44  ;;  %v1288_v18 = vpop.f32.mrb[3].mxu0 }
 0x435   :  { %1348 = vst [vmem:[#allocation8] sm:$0xff] %v1286_v30  ;;  %v1289_v8 = vadd.f32 %v1391_v44, %v1288_v18  ;;  %v1490_v25 = vpop.f32.mrb[0].mxu1 }
 0x436   :  { %1351 = vst [vmem:[#allocation8 + $0x18] sm:$0xff] %v1297_v15  ;;  %v1326_v32 = vadd.f32 %v1490_v25, %v1391_v44  ;;  %v1317_v22 = vpop.f32.mrb[1].mxu1 }
 0x437   :  { %1349 = vst [vmem:[#allocation8 + $0x8] sm:$0xff] %v1289_v8  ;;  %v1318_v24 = vadd.f32 %v1391_v44, %v1317_v22  ;;  %v1491_v9 = vpop.f32.mrb[2].mxu1 }
 0x438   :  { %1358 = vst [vmem:[#allocation8 + $0x50] sm:$0xff] %v1326_v32  ;;  %v1329_v11 = vadd.f32 %v1491_v9, %v1391_v44  ;;  %v1320_v55 = vpop.f32.mrb[3].mxu1 }
 0x439   :  { %1356 = vst [vmem:[#allocation8 + $0x40] sm:$0xff] %v1318_v24  ;;  %v1321_v26 = vadd.f32 %v1391_v44, %v1320_v55 }
 0x43a   :  { %1359 = vst [vmem:[#allocation8 + $0x58] sm:$0xff] %v1329_v11 }
 0x43b   :  { %1357 = vst [vmem:[#allocation8 + $0x48] sm:$0xff] %v1321_v26 }
 0x441   :  { %v1486_v17 = vpop.f32.mrb[4].mxu0 }
 0x442   :  { %v1310_v27 = vadd.f32 %v1486_v17, %v1391_v44  ;;  %v1301_v23 = vpop.f32.mrb[5].mxu0 }
 0x443   :  { %v1302_v43 = vadd.f32 %v1391_v44, %v1301_v23  ;;  %v1487_v48 = vpop.f32.mrb[6].mxu0 }
 0x444   :  { %1354 = vst [vmem:[#allocation8 + $0x30] sm:$0xff] %v1310_v27  ;;  %v1313_v1 = vadd.f32 %v1487_v48, %v1391_v44  ;;  %v1304_v37 = vpop.f32.mrb[7].mxu0 }
 0x445   :  { %1352 = vst [vmem:[#allocation8 + $0x20] sm:$0xff] %v1302_v43  ;;  %v1305_v34 = vadd.f32 %v1391_v44, %v1304_v37  ;;  %v1494_v53 = vpop.f32.mrb[4].mxu1 }
 0x446   :  { %1355 = vst [vmem:[#allocation8 + $0x38] sm:$0xff] %v1313_v1  ;;  %v1342_v38 = vadd.f32 %v1494_v53, %v1391_v44  ;;  %v1333_v51 = vpop.f32.mrb[5].mxu1 }
 0x447   :  { %1353 = vst [vmem:[#allocation8 + $0x28] sm:$0xff] %v1305_v34  ;;  %v1334_v16 = vadd.f32 %v1391_v44, %v1333_v51  ;;  %v1495_v19 = vpop.f32.mrb[6].mxu1 }
 0x448   :  { %1362 = vst [vmem:[#allocation8 + $0x70] sm:$0xff] %v1342_v38  ;;  %v1345_v40 = vadd.f32 %v1495_v19, %v1391_v44  ;;  %v1336_v45 = vpop.f32.mrb[7].mxu1 }
 0x449   :  { %1360 = vst [vmem:[#allocation8 + $0x60] sm:$0xff] %v1334_v16  ;;  %v1337_v60 = vadd.f32 %v1391_v44, %v1336_v45 }
 0x44a   :  { %1363 = vst [vmem:[#allocation8 + $0x78] sm:$0xff] %v1345_v40 }
 0x44b   :  { %1361 = vst [vmem:[#allocation8 + $0x68] sm:$0xff] %v1337_v60 }
 0x44c   :  { %1662 = shalt.err (!%p1659_p7)
}
 0x44d   :  { %s1663_s0 = scalar_lea.hbm %s2321_s8, 2048 }
 0x44e   :  { %p1664_p8 = scmp.ne.s32.totalorder %s2321_s8, %s1663_s0  ;;  %p1667_p9 = scmp.lt.u32.totalorder %s1663_s0, %s2321_s8 }
 0x450   :  { %p1669_p10 = pnand %p1667_p9, %p1664_p8 }
 0x452   :  { %1672 = shalt.err (!%p1669_p10)
}
 0x453   :  { %s1680_s17 = smov 128   ;;  %s1681_s18 = smov 8  }
 0x454   :  { %1375 = dma.vmem_to_hbm [thread:$0]  %s1370_s10, 2048, %s2321_s8, [#allocation9], %s1680_s17, %s1680_s17, %s1681_s18  }
 0x455   :  { %1673 = dma.done.wait [#allocation9], 2048  }
 0x456   :  { %1674 = vsyncadd [#allocation9], 4294965248 }
 0x457   :  { %1379 = vsyncpa [#allocation9], 1 }

</bundles_post_ra>
